<compile_context>
chip_gen: v5e
topology: v5e:2x2
jax: 0.10.0
libtpu: 0.0.40
codegen_flags: <defaults>
</compile_context>

<pallas_src>
import jax
import jax.numpy as jnp
from jax.experimental import pallas as pl
from jax.experimental.pallas import tpu as pltpu

EPS = 1e-6


def _gelu(x):
    # TODO(synk): PyTorch nn.GELU default is the exact erf formulation; the
    # tanh approximation is used here for guaranteed Mosaic lowering (EUP tanh).
    return jax.nn.gelu(x, approximate=True)


def _layernorm(v, gamma, beta):
    # Single-pass statistics: var = E[x^2] - mu^2 (clamped), instead of two
    # dependent reductions over the tile.
    mu = jnp.mean(v, axis=-1, keepdims=True)
    ex2 = jnp.mean(v * v, axis=-1, keepdims=True)
    var = jnp.maximum(ex2 - mu * mu, 0.0)
    return (v - mu) * jax.lax.rsqrt(var + EPS) * gamma + beta


def mixer_block_kernel(
    x_ref,                      # (1, S, D)  f32
    g1_ref, b1_ref,             # (1, D)     f32
    wt1_ref, bt1_ref,           # (Dt, S) bf16, (Dt, 1) f32   token Linear1 (torch layout)
    wt2_ref, bt2_ref,           # (S, Dt) bf16, (S, 1)  f32   token Linear2 (torch layout)
    g2_ref, b2_ref,             # (1, D)     f32
    wc1_ref, bc1_ref,           # (D, Dc) bf16, (1, Dc) f32   channel Linear1
    wc2_ref, bc2_ref,           # (Dc, D) bf16, (1, D)  f32   channel Linear2
    out_ref,                    # (1, S, D)  f32
):
    x = x_ref[0].astype(jnp.float32)                      # (S, D)

    # ---- token mixing branch (transposes folded into the matmuls) ----------
    y = _layernorm(x, g1_ref[...], b1_ref[...])           # (S, D) f32
    h_t = jnp.dot(wt1_ref[...], y.astype(jnp.bfloat16),
                  preferred_element_type=jnp.float32)     # (Dt, D) = fc1(y^T)^T
    h_t = _gelu(h_t + bt1_ref[...])                       # bt1 (Dt,1) bcast over D
    t_t = jnp.dot(wt2_ref[...], h_t.astype(jnp.bfloat16),
                  preferred_element_type=jnp.float32)     # (S, D) = fc2(h)^T
    x = x + t_t + bt2_ref[...]                            # bt2 (S,1) bcast over D

    # ---- channel mixing branch ----------------------------------------------
    # TODO(synk): for very large Dc on v7x (64 MiB VMEM) tile this MLP over Dc.
    z = _layernorm(x, g2_ref[...], b2_ref[...])           # (S, D) f32
    h2 = _gelu(
        jnp.dot(z.astype(jnp.bfloat16), wc1_ref[...],
                preferred_element_type=jnp.float32)
        + bc1_ref[...]
    )                                                     # (S, Dc) f32
    c = (
        jnp.dot(h2.astype(jnp.bfloat16), wc2_ref[...],
                preferred_element_type=jnp.float32)
        + bc2_ref[...]
    )                                                     # (S, D) f32

    out_ref[0] = (x + c).astype(out_ref.dtype)


def _vmem_budget_bytes(S, D, Dt, Dc):
    f32, bf16 = 4, 2
    x_block = S * D * f32
    weights = (Dt * S + S * Dt + D * Dc + Dc * D) * bf16
    small = (4 * D + Dt + S + Dc + D) * f32                  # norms + biases
    interm = (Dt * D + S * Dc + 2 * S * D) * f32             # h_t, h2, residuals
    total = 2 * x_block + 2 * x_block + weights + small + interm
    total = int(total * 1.5)                                 # compiler headroom
    return max(16 * 1024 * 1024, min(total, 64 * 1024 * 1024))


def mixer_block(x, params):
    """x: (B, S, D) float32. params: dict of weights (see make_params)."""
    B, S, D = x.shape
    Dt = params["wt1"].shape[0]
    Dc = params["wc1"].shape[1]

    args = (
        x,
        params["g1"], params["b1"],
        params["wt1"], params["bt1"],
        params["wt2"], params["bt2"],
        params["g2"], params["b2"],
        params["wc1"], params["bc1"],
        params["wc2"], params["bc2"],
    )

    def build(resident_weights):
        if resident_weights:
            # Whole array lives in VMEM once (no per-grid-step double-buffering).
            def wspec(shape):
                del shape
                return pl.BlockSpec(memory_space=pltpu.MemorySpace.VMEM)
        else:
            # Fallback: full-array blocked spec, constant index map.
            def wspec(shape):
                zeros = (0,) * len(shape)
                return pl.BlockSpec(shape, lambda b, _z=zeros: _z)

        in_specs = [
            pl.BlockSpec((1, S, D), lambda b: (b, 0, 0)),   # x: pipelined over batch
            wspec((1, D)), wspec((1, D)),                   # norm1 gamma/beta
            wspec((Dt, S)), wspec((Dt, 1)),                 # token Linear1
            wspec((S, Dt)), wspec((S, 1)),                  # token Linear2
            wspec((1, D)), wspec((1, D)),                   # norm2 gamma/beta
            wspec((D, Dc)), wspec((1, Dc)),                 # channel Linear1
            wspec((Dc, D)), wspec((1, D)),                  # channel Linear2
        ]

        return pl.pallas_call(
            mixer_block_kernel,
            out_shape=jax.ShapeDtypeStruct((B, S, D), x.dtype),
            grid_spec=pltpu.PrefetchScalarGridSpec(
                num_scalar_prefetch=0,
                grid=(B,),
                in_specs=in_specs,
                out_specs=pl.BlockSpec((1, S, D), lambda b: (b, 0, 0)),
            ),
            compiler_params=pltpu.CompilerParams(
                dimension_semantics=("parallel",),
                vmem_limit_bytes=_vmem_budget_bytes(S, D, Dt, Dc),
            ),
        )

    try:
        return jax.block_until_ready(build(True)(*args))
    except Exception:
        # Conservative fallback if VMEM-resident operand specs are rejected on
        # this jax/libtpu combo: blocked (double-buffered) weight specs.
        return build(False)(*args)


def make_params(key, hidden_dim, sequence_len, ratio=(0.5, 4.0)):
    D, S = hidden_dim, sequence_len
    Dt = int(D * ratio[0])
    Dc = int(D * ratio[1])
    ks = jax.random.split(key, 8)
    scale = 0.02
    wdt = jnp.bfloat16  # weights stored bf16 in HBM (halves DMA + VMEM footprint)
    return {
        # LayerNorm affine params (init like nn.LayerNorm: ones/zeros), f32.
        "g1": jnp.ones((1, D), jnp.float32),
        "b1": jnp.zeros((1, D), jnp.float32),
        "g2": jnp.ones((1, D), jnp.float32),
        "b2": jnp.zeros((1, D), jnp.float32),
        # Token mixing MlpBlock: Linear(S -> Dt), GELU, Linear(Dt -> S).
        # Stored in torch-native (out, in) layout so the transpose folds away.
        "wt1": (scale * jax.random.normal(ks[0], (Dt, S), jnp.float32)).astype(wdt),
        "bt1": scale * jax.random.normal(ks[1], (Dt, 1), jnp.float32),
        "wt2": (scale * jax.random.normal(ks[2], (S, Dt), jnp.float32)).astype(wdt),
        "bt2": scale * jax.random.normal(ks[3], (S, 1), jnp.float32),
        # Channel mixing MlpBlock: Linear(D -> Dc), GELU, Linear(Dc -> D).
        # Stored (in, out) so y = z @ W + b.
        "wc1": (scale * jax.random.normal(ks[4], (D, Dc), jnp.float32)).astype(wdt),
        "bc1": scale * jax.random.normal(ks[5], (1, Dc), jnp.float32),
        "wc2": (scale * jax.random.normal(ks[6], (Dc, D), jnp.float32)).astype(wdt),
        "bc2": scale * jax.random.normal(ks[7], (1, D), jnp.float32),
    }


def mixer_block_ref(x, p):
    """Pure-JAX (f32) reference mirroring the PyTorch forward."""
    def ln(v, g, b):
        mu = jnp.mean(v, -1, keepdims=True)
        var = jnp.mean((v - mu) ** 2, -1, keepdims=True)
        return (v - mu) / jnp.sqrt(var + EPS) * g + b

    wt1 = p["wt1"].astype(jnp.float32)   # (Dt, S)
    wt2 = p["wt2"].astype(jnp.float32)   # (S, Dt)
    wc1 = p["wc1"].astype(jnp.float32)   # (D, Dc)
    wc2 = p["wc2"].astype(jnp.float32)   # (Dc, D)

    y = ln(x, p["g1"][0], p["b1"][0])                 # (B, S, D)
    yt = jnp.swapaxes(y, 1, 2)                        # (B, D, S)
    h = _gelu(yt @ wt1.T + p["bt1"][:, 0])            # (B, D, Dt)
    t = h @ wt2.T + p["bt2"][:, 0]                    # (B, D, S)
    x = x + jnp.swapaxes(t, 1, 2)
    z = ln(x, p["g2"][0], p["b2"][0])
    c = _gelu(z @ wc1 + p["bc1"][0]) @ wc2 + p["bc2"][0]
    return x + c


if __name__ == "__main__":
    key = jax.random.PRNGKey(0)
    k_x, k_p = jax.random.split(key)

    # B=2 keeps the parallel batch axis >= 2 (both v7x TensorCores busy);
    # D=128 keeps the output last dim lane-dense while staying small.
    B, S, D = 2, 8, 128
    x = jax.random.normal(k_x, (B, S, D), jnp.float32)
    params = make_params(k_p, hidden_dim=D, sequence_len=S)

    out = jax.block_until_ready(mixer_block(x, params))
    ref = mixer_block_ref(x, params)

    assert out.shape == (B, S, D)
    err = float(jnp.max(jnp.abs(out - ref)))
    # bf16 matmul operands vs f32 reference -> allow small drift.
    assert err < 2e-2, f"mismatch vs reference: max abs err = {err}"

    print("KERNEL_OK")
</pallas_src>

<mosaic_0001>
module attributes {stable_mosaic.version = 11 : i64} {
  func.func @mixer_block_kernel(%arg0: i32, %arg1: memref<1x8x128xf32, #tpu.memory_space<vmem>>, %arg2: memref<1x128xf32, #tpu.memory_space<vmem>>, %arg3: memref<1x128xf32, #tpu.memory_space<vmem>>, %arg4: memref<64x8xbf16, #tpu.memory_space<vmem>>, %arg5: memref<64x1xf32, #tpu.memory_space<vmem>>, %arg6: memref<8x64xbf16, #tpu.memory_space<vmem>>, %arg7: memref<8x1xf32, #tpu.memory_space<vmem>>, %arg8: memref<1x128xf32, #tpu.memory_space<vmem>>, %arg9: memref<1x128xf32, #tpu.memory_space<vmem>>, %arg10: memref<128x512xbf16, #tpu.memory_space<vmem>>, %arg11: memref<1x512xf32, #tpu.memory_space<vmem>>, %arg12: memref<512x128xbf16, #tpu.memory_space<vmem>>, %arg13: memref<1x128xf32, #tpu.memory_space<vmem>>, %arg14: memref<1x8x128xf32, #tpu.memory_space<vmem>>) attributes {dimension_semantics = [#tpu.dimension_semantics<parallel>], iteration_bounds = array<i64: 2>, scalar_prefetch = 0 : i64, scratch_operands = 0 : i64, tpu.core_type = #tpu.core_type<tc>, window_params = [{transform_indices = @transform_0, window_bounds = array<i64: 1, 8, 128>}, {pipeline_mode = #tpu.pipeline_mode<synchronous>, transform_indices = @transform_1, window_bounds = array<i64: 1, 128>}, {pipeline_mode = #tpu.pipeline_mode<synchronous>, transform_indices = @transform_2, window_bounds = array<i64: 1, 128>}, {pipeline_mode = #tpu.pipeline_mode<synchronous>, transform_indices = @transform_3, window_bounds = array<i64: 64, 8>}, {pipeline_mode = #tpu.pipeline_mode<synchronous>, transform_indices = @transform_4, window_bounds = array<i64: 64, 1>}, {pipeline_mode = #tpu.pipeline_mode<synchronous>, transform_indices = @transform_5, window_bounds = array<i64: 8, 64>}, {pipeline_mode = #tpu.pipeline_mode<synchronous>, transform_indices = @transform_6, window_bounds = array<i64: 8, 1>}, {pipeline_mode = #tpu.pipeline_mode<synchronous>, transform_indices = @transform_7, window_bounds = array<i64: 1, 128>}, {pipeline_mode = #tpu.pipeline_mode<synchronous>, transform_indices = @transform_8, window_bounds = array<i64: 1, 128>}, {pipeline_mode = #tpu.pipeline_mode<synchronous>, transform_indices = @transform_9, window_bounds = array<i64: 128, 512>}, {pipeline_mode = #tpu.pipeline_mode<synchronous>, transform_indices = @transform_10, window_bounds = array<i64: 1, 512>}, {pipeline_mode = #tpu.pipeline_mode<synchronous>, transform_indices = @transform_11, window_bounds = array<i64: 512, 128>}, {pipeline_mode = #tpu.pipeline_mode<synchronous>, transform_indices = @transform_12, window_bounds = array<i64: 1, 128>}, {transform_indices = @transform_13, window_bounds = array<i64: 1, 8, 128>}]} {
    %c0 = arith.constant 0 : index
    %c0_0 = arith.constant 0 : index
    %c0_1 = arith.constant 0 : index
    %0 = vector.load %arg1[%c0, %c0_0, %c0_1] : memref<1x8x128xf32, #tpu.memory_space<vmem>>, vector<1x8x128xf32>
    %1 = vector.shape_cast %0 : vector<1x8x128xf32> to vector<8x128xf32>
    %c0_2 = arith.constant 0 : index
    %c0_3 = arith.constant 0 : index
    %2 = vector.load %arg2[%c0_2, %c0_3] : memref<1x128xf32, #tpu.memory_space<vmem>>, vector<1x128xf32>
    %c0_4 = arith.constant 0 : index
    %c0_5 = arith.constant 0 : index
    %3 = vector.load %arg3[%c0_4, %c0_5] : memref<1x128xf32, #tpu.memory_space<vmem>>, vector<1x128xf32>
    %cst = arith.constant dense<0.000000e+00> : vector<8xf32>
    %4 = vector.multi_reduction <add>, %1, %cst [1] : vector<8x128xf32> to vector<8xf32>
    %5 = vector.shape_cast %4 : vector<8xf32> to vector<8x1xf32>
    %cst_6 = arith.constant 1.280000e+02 : f32
    %6 = vector.broadcast %cst_6 : f32 to vector<8x1xf32>
    %7 = arith.divf %5, %6 : vector<8x1xf32>
    %8 = arith.mulf %1, %1 : vector<8x128xf32>
    %cst_7 = arith.constant dense<0.000000e+00> : vector<8xf32>
    %9 = vector.multi_reduction <add>, %8, %cst_7 [1] : vector<8x128xf32> to vector<8xf32>
    %10 = vector.shape_cast %9 : vector<8xf32> to vector<8x1xf32>
    %cst_8 = arith.constant 1.280000e+02 : f32
    %11 = vector.broadcast %cst_8 : f32 to vector<8x1xf32>
    %12 = arith.divf %10, %11 : vector<8x1xf32>
    %13 = arith.mulf %7, %7 : vector<8x1xf32>
    %14 = arith.subf %12, %13 : vector<8x1xf32>
    %cst_9 = arith.constant 0.000000e+00 : f32
    %15 = vector.broadcast %cst_9 : f32 to vector<8x1xf32>
    %16 = arith.maximumf %14, %15 : vector<8x1xf32>
    %17 = vector.broadcast %7 : vector<8x1xf32> to vector<8x128xf32>
    %18 = arith.subf %1, %17 : vector<8x128xf32>
    %cst_10 = arith.constant 9.99999997E-7 : f32
    %19 = vector.broadcast %cst_10 : f32 to vector<8x1xf32>
    %20 = arith.addf %16, %19 : vector<8x1xf32>
    %21 = math.rsqrt %20 : vector<8x1xf32>
    %22 = vector.broadcast %21 : vector<8x1xf32> to vector<8x128xf32>
    %23 = arith.mulf %18, %22 : vector<8x128xf32>
    %24 = vector.broadcast %2 : vector<1x128xf32> to vector<8x128xf32>
    %25 = arith.mulf %23, %24 : vector<8x128xf32>
    %26 = vector.broadcast %3 : vector<1x128xf32> to vector<8x128xf32>
    %27 = arith.addf %25, %26 : vector<8x128xf32>
    %c0_11 = arith.constant 0 : index
    %c0_12 = arith.constant 0 : index
    %28 = vector.load %arg4[%c0_11, %c0_12] : memref<64x8xbf16, #tpu.memory_space<vmem>>, vector<64x8xbf16>
    %29 = arith.truncf %27 : vector<8x128xf32> to vector<8x128xbf16>
    %cst_13 = arith.constant dense<0.000000e+00> : vector<64x128xf32>
    %30 = tpu.matmul %28, %29, %cst_13 {dimension_numbers = #tpu.dot_dimension_numbers<[1], [0], [0], [1], [0, 0, 1, 1], [], []>} : vector<64x8xbf16>, vector<8x128xbf16>, vector<64x128xf32> -> vector<64x128xf32>
    %c0_14 = arith.constant 0 : index
    %c0_15 = arith.constant 0 : index
    %31 = vector.load %arg5[%c0_14, %c0_15] : memref<64x1xf32, #tpu.memory_space<vmem>>, vector<64x1xf32>
    %32 = vector.broadcast %31 : vector<64x1xf32> to vector<64x128xf32>
    %33 = arith.addf %30, %32 : vector<64x128xf32>
    %34 = arith.mulf %33, %33 : vector<64x128xf32>
    %35 = arith.mulf %33, %34 : vector<64x128xf32>
    %cst_16 = arith.constant 4.471500e-02 : f32
    %36 = vector.broadcast %cst_16 : f32 to vector<64x128xf32>
    %37 = arith.mulf %36, %35 : vector<64x128xf32>
    %38 = arith.addf %33, %37 : vector<64x128xf32>
    %cst_17 = arith.constant 0.797884583 : f32
    %39 = vector.broadcast %cst_17 : f32 to vector<64x128xf32>
    %40 = arith.mulf %39, %38 : vector<64x128xf32>
    %41 = math.tanh %40 : vector<64x128xf32>
    %cst_18 = arith.constant 1.000000e+00 : f32
    %42 = vector.broadcast %cst_18 : f32 to vector<64x128xf32>
    %43 = arith.addf %42, %41 : vector<64x128xf32>
    %cst_19 = arith.constant 5.000000e-01 : f32
    %44 = vector.broadcast %cst_19 : f32 to vector<64x128xf32>
    %45 = arith.mulf %44, %43 : vector<64x128xf32>
    %46 = arith.mulf %33, %45 : vector<64x128xf32>
    %c0_20 = arith.constant 0 : index
    %c0_21 = arith.constant 0 : index
    %47 = vector.load %arg6[%c0_20, %c0_21] : memref<8x64xbf16, #tpu.memory_space<vmem>>, vector<8x64xbf16>
    %48 = arith.truncf %46 : vector<64x128xf32> to vector<64x128xbf16>
    %cst_22 = arith.constant dense<0.000000e+00> : vector<8x128xf32>
    %49 = tpu.matmul %47, %48, %cst_22 {dimension_numbers = #tpu.dot_dimension_numbers<[1], [0], [0], [1], [0, 0, 1, 1], [], []>} : vector<8x64xbf16>, vector<64x128xbf16>, vector<8x128xf32> -> vector<8x128xf32>
    %50 = arith.addf %1, %49 : vector<8x128xf32>
    %c0_23 = arith.constant 0 : index
    %c0_24 = arith.constant 0 : index
    %51 = vector.load %arg7[%c0_23, %c0_24] : memref<8x1xf32, #tpu.memory_space<vmem>>, vector<8x1xf32>
    %52 = vector.broadcast %51 : vector<8x1xf32> to vector<8x128xf32>
    %53 = arith.addf %50, %52 : vector<8x128xf32>
    %c0_25 = arith.constant 0 : index
    %c0_26 = arith.constant 0 : index
    %54 = vector.load %arg8[%c0_25, %c0_26] : memref<1x128xf32, #tpu.memory_space<vmem>>, vector<1x128xf32>
    %c0_27 = arith.constant 0 : index
    %c0_28 = arith.constant 0 : index
    %55 = vector.load %arg9[%c0_27, %c0_28] : memref<1x128xf32, #tpu.memory_space<vmem>>, vector<1x128xf32>
    %cst_29 = arith.constant dense<0.000000e+00> : vector<8xf32>
    %56 = vector.multi_reduction <add>, %53, %cst_29 [1] : vector<8x128xf32> to vector<8xf32>
    %57 = vector.shape_cast %56 : vector<8xf32> to vector<8x1xf32>
    %cst_30 = arith.constant 1.280000e+02 : f32
    %58 = vector.broadcast %cst_30 : f32 to vector<8x1xf32>
    %59 = arith.divf %57, %58 : vector<8x1xf32>
    %60 = arith.mulf %53, %53 : vector<8x128xf32>
    %cst_31 = arith.constant dense<0.000000e+00> : vector<8xf32>
    %61 = vector.multi_reduction <add>, %60, %cst_31 [1] : vector<8x128xf32> to vector<8xf32>
    %62 = vector.shape_cast %61 : vector<8xf32> to vector<8x1xf32>
    %cst_32 = arith.constant 1.280000e+02 : f32
    %63 = vector.broadcast %cst_32 : f32 to vector<8x1xf32>
    %64 = arith.divf %62, %63 : vector<8x1xf32>
    %65 = arith.mulf %59, %59 : vector<8x1xf32>
    %66 = arith.subf %64, %65 : vector<8x1xf32>
    %cst_33 = arith.constant 0.000000e+00 : f32
    %67 = vector.broadcast %cst_33 : f32 to vector<8x1xf32>
    %68 = arith.maximumf %66, %67 : vector<8x1xf32>
    %69 = vector.broadcast %59 : vector<8x1xf32> to vector<8x128xf32>
    %70 = arith.subf %53, %69 : vector<8x128xf32>
    %cst_34 = arith.constant 9.99999997E-7 : f32
    %71 = vector.broadcast %cst_34 : f32 to vector<8x1xf32>
    %72 = arith.addf %68, %71 : vector<8x1xf32>
    %73 = math.rsqrt %72 : vector<8x1xf32>
    %74 = vector.broadcast %73 : vector<8x1xf32> to vector<8x128xf32>
    %75 = arith.mulf %70, %74 : vector<8x128xf32>
    %76 = vector.broadcast %54 : vector<1x128xf32> to vector<8x128xf32>
    %77 = arith.mulf %75, %76 : vector<8x128xf32>
    %78 = vector.broadcast %55 : vector<1x128xf32> to vector<8x128xf32>
    %79 = arith.addf %77, %78 : vector<8x128xf32>
    %80 = arith.truncf %79 : vector<8x128xf32> to vector<8x128xbf16>
    %c0_35 = arith.constant 0 : index
    %c0_36 = arith.constant 0 : index
    %81 = vector.load %arg10[%c0_35, %c0_36] : memref<128x512xbf16, #tpu.memory_space<vmem>>, vector<128x512xbf16>
    %cst_37 = arith.constant dense<0.000000e+00> : vector<8x512xf32>
    %82 = tpu.matmul %80, %81, %cst_37 {dimension_numbers = #tpu.dot_dimension_numbers<[1], [0], [0], [1], [0, 0, 1, 1], [], []>} : vector<8x128xbf16>, vector<128x512xbf16>, vector<8x512xf32> -> vector<8x512xf32>
    %c0_38 = arith.constant 0 : index
    %c0_39 = arith.constant 0 : index
    %83 = vector.load %arg11[%c0_38, %c0_39] : memref<1x512xf32, #tpu.memory_space<vmem>>, vector<1x512xf32>
    %84 = vector.broadcast %83 : vector<1x512xf32> to vector<8x512xf32>
    %85 = arith.addf %82, %84 : vector<8x512xf32>
    %86 = arith.mulf %85, %85 : vector<8x512xf32>
    %87 = arith.mulf %85, %86 : vector<8x512xf32>
    %cst_40 = arith.constant 4.471500e-02 : f32
    %88 = vector.broadcast %cst_40 : f32 to vector<8x512xf32>
    %89 = arith.mulf %88, %87 : vector<8x512xf32>
    %90 = arith.addf %85, %89 : vector<8x512xf32>
    %cst_41 = arith.constant 0.797884583 : f32
    %91 = vector.broadcast %cst_41 : f32 to vector<8x512xf32>
    %92 = arith.mulf %91, %90 : vector<8x512xf32>
    %93 = math.tanh %92 : vector<8x512xf32>
    %cst_42 = arith.constant 1.000000e+00 : f32
    %94 = vector.broadcast %cst_42 : f32 to vector<8x512xf32>
    %95 = arith.addf %94, %93 : vector<8x512xf32>
    %cst_43 = arith.constant 5.000000e-01 : f32
    %96 = vector.broadcast %cst_43 : f32 to vector<8x512xf32>
    %97 = arith.mulf %96, %95 : vector<8x512xf32>
    %98 = arith.mulf %85, %97 : vector<8x512xf32>
    %99 = arith.truncf %98 : vector<8x512xf32> to vector<8x512xbf16>
    %c0_44 = arith.constant 0 : index
    %c0_45 = arith.constant 0 : index
    %100 = vector.load %arg12[%c0_44, %c0_45] : memref<512x128xbf16, #tpu.memory_space<vmem>>, vector<512x128xbf16>
    %cst_46 = arith.constant dense<0.000000e+00> : vector<8x128xf32>
    %101 = tpu.matmul %99, %100, %cst_46 {dimension_numbers = #tpu.dot_dimension_numbers<[1], [0], [0], [1], [0, 0, 1, 1], [], []>} : vector<8x512xbf16>, vector<512x128xbf16>, vector<8x128xf32> -> vector<8x128xf32>
    %c0_47 = arith.constant 0 : index
    %c0_48 = arith.constant 0 : index
    %102 = vector.load %arg13[%c0_47, %c0_48] : memref<1x128xf32, #tpu.memory_space<vmem>>, vector<1x128xf32>
    %103 = vector.broadcast %102 : vector<1x128xf32> to vector<8x128xf32>
    %104 = arith.addf %101, %103 : vector<8x128xf32>
    %105 = arith.addf %53, %104 : vector<8x128xf32>
    %c0_49 = arith.constant 0 : index
    %c0_50 = arith.constant 0 : index
    %c0_51 = arith.constant 0 : index
    %106 = vector.load %arg14[%c0_49, %c0_50, %c0_51] : memref<1x8x128xf32, #tpu.memory_space<vmem>>, vector<1x8x128xf32>
    %107 = vector.shape_cast %106 : vector<1x8x128xf32> to vector<8x128xf32>
    %108 = vector.shape_cast %105 : vector<8x128xf32> to vector<1x8x128xf32>
    tpu.vector_store %arg14[%c0_49, %c0_50, %c0_51], %108 {strides = array<i32>} : memref<1x8x128xf32, #tpu.memory_space<vmem>>, vector<1x8x128xf32>,
    return
  }
  func.func @transform_0(%arg0: i32) -> (i32, i32, i32) {
    %c0_i32 = arith.constant 0 : i32
    %c0_i32_0 = arith.constant 0 : i32
    %c0_i32_1 = arith.constant 0 : i32
    return %arg0, %c0_i32, %c0_i32_0 : i32, i32, i32
  }
  func.func @transform_1(%arg0: i32) -> (i32, i32) {
    %c0_i32 = arith.constant 0 : i32
    %c0_i32_0 = arith.constant 0 : i32
    %c0_i32_1 = arith.constant 0 : i32
    return %c0_i32, %c0_i32_0 : i32, i32
  }
  func.func @transform_2(%arg0: i32) -> (i32, i32) {
    %c0_i32 = arith.constant 0 : i32
    %c0_i32_0 = arith.constant 0 : i32
    %c0_i32_1 = arith.constant 0 : i32
    return %c0_i32, %c0_i32_0 : i32, i32
  }
  func.func @transform_3(%arg0: i32) -> (i32, i32) {
    %c0_i32 = arith.constant 0 : i32
    %c0_i32_0 = arith.constant 0 : i32
    %c0_i32_1 = arith.constant 0 : i32
    return %c0_i32, %c0_i32_0 : i32, i32
  }
  func.func @transform_4(%arg0: i32) -> (i32, i32) {
    %c0_i32 = arith.constant 0 : i32
    %c0_i32_0 = arith.constant 0 : i32
    %c0_i32_1 = arith.constant 0 : i32
    return %c0_i32, %c0_i32_0 : i32, i32
  }
  func.func @transform_5(%arg0: i32) -> (i32, i32) {
    %c0_i32 = arith.constant 0 : i32
    %c0_i32_0 = arith.constant 0 : i32
    %c0_i32_1 = arith.constant 0 : i32
    return %c0_i32, %c0_i32_0 : i32, i32
  }
  func.func @transform_6(%arg0: i32) -> (i32, i32) {
    %c0_i32 = arith.constant 0 : i32
    %c0_i32_0 = arith.constant 0 : i32
    %c0_i32_1 = arith.constant 0 : i32
    return %c0_i32, %c0_i32_0 : i32, i32
  }
  func.func @transform_7(%arg0: i32) -> (i32, i32) {
    %c0_i32 = arith.constant 0 : i32
    %c0_i32_0 = arith.constant 0 : i32
    %c0_i32_1 = arith.constant 0 : i32
    return %c0_i32, %c0_i32_0 : i32, i32
  }
  func.func @transform_8(%arg0: i32) -> (i32, i32) {
    %c0_i32 = arith.constant 0 : i32
    %c0_i32_0 = arith.constant 0 : i32
    %c0_i32_1 = arith.constant 0 : i32
    return %c0_i32, %c0_i32_0 : i32, i32
  }
  func.func @transform_9(%arg0: i32) -> (i32, i32) {
    %c0_i32 = arith.constant 0 : i32
    %c0_i32_0 = arith.constant 0 : i32
    %c0_i32_1 = arith.constant 0 : i32
    return %c0_i32, %c0_i32_0 : i32, i32
  }
  func.func @transform_10(%arg0: i32) -> (i32, i32) {
    %c0_i32 = arith.constant 0 : i32
    %c0_i32_0 = arith.constant 0 : i32
    %c0_i32_1 = arith.constant 0 : i32
    return %c0_i32, %c0_i32_0 : i32, i32
  }
  func.func @transform_11(%arg0: i32) -> (i32, i32) {
    %c0_i32 = arith.constant 0 : i32
    %c0_i32_0 = arith.constant 0 : i32
    %c0_i32_1 = arith.constant 0 : i32
    return %c0_i32, %c0_i32_0 : i32, i32
  }
  func.func @transform_12(%arg0: i32) -> (i32, i32) {
    %c0_i32 = arith.constant 0 : i32
    %c0_i32_0 = arith.constant 0 : i32
    %c0_i32_1 = arith.constant 0 : i32
    return %c0_i32, %c0_i32_0 : i32, i32
  }
  func.func @transform_13(%arg0: i32) -> (i32, i32, i32) {
    %c0_i32 = arith.constant 0 : i32
    %c0_i32_0 = arith.constant 0 : i32
    %c0_i32_1 = arith.constant 0 : i32
    return %arg0, %c0_i32, %c0_i32_0 : i32, i32, i32
  }
}

module attributes {stable_mosaic.version = 11 : i64} {
  func.func @mixer_block_kernel(%arg0: i32, %arg1: memref<1x8x128xf32, #tpu.memory_space<vmem>>, %arg2: memref<1x128xf32, #tpu.memory_space<vmem>>, %arg3: memref<1x128xf32, #tpu.memory_space<vmem>>, %arg4: memref<64x8xbf16, #tpu.memory_space<vmem>>, %arg5: memref<64x1xf32, #tpu.memory_space<vmem>>, %arg6: memref<8x64xbf16, #tpu.memory_space<vmem>>, %arg7: memref<8x1xf32, #tpu.memory_space<vmem>>, %arg8: memref<1x128xf32, #tpu.memory_space<vmem>>, %arg9: memref<1x128xf32, #tpu.memory_space<vmem>>, %arg10: memref<128x512xbf16, #tpu.memory_space<vmem>>, %arg11: memref<1x512xf32, #tpu.memory_space<vmem>>, %arg12: memref<512x128xbf16, #tpu.memory_space<vmem>>, %arg13: memref<1x128xf32, #tpu.memory_space<vmem>>, %arg14: memref<1x8x128xf32, #tpu.memory_space<vmem>>) attributes {dimension_semantics = [#tpu.dimension_semantics<parallel>], iteration_bounds = array<i64: 2>, scalar_prefetch = 0 : i64, scratch_operands = 0 : i64, tpu.core_type = #tpu.core_type<tc>, window_params = [{transform_indices = @transform_0, window_bounds = array<i64: 1, 8, 128>}, {pipeline_mode = #tpu.pipeline_mode<synchronous>, transform_indices = @transform_1, window_bounds = array<i64: 1, 128>}, {pipeline_mode = #tpu.pipeline_mode<synchronous>, transform_indices = @transform_2, window_bounds = array<i64: 1, 128>}, {pipeline_mode = #tpu.pipeline_mode<synchronous>, transform_indices = @transform_3, window_bounds = array<i64: 64, 8>}, {pipeline_mode = #tpu.pipeline_mode<synchronous>, transform_indices = @transform_4, window_bounds = array<i64: 64, 1>}, {pipeline_mode = #tpu.pipeline_mode<synchronous>, transform_indices = @transform_5, window_bounds = array<i64: 8, 64>}, {pipeline_mode = #tpu.pipeline_mode<synchronous>, transform_indices = @transform_6, window_bounds = array<i64: 8, 1>}, {pipeline_mode = #tpu.pipeline_mode<synchronous>, transform_indices = @transform_7, window_bounds = array<i64: 1, 128>}, {pipeline_mode = #tpu.pipeline_mode<synchronous>, transform_indices = @transform_8, window_bounds = array<i64: 1, 128>}, {pipeline_mode = #tpu.pipeline_mode<synchronous>, transform_indices = @transform_9, window_bounds = array<i64: 128, 512>}, {pipeline_mode = #tpu.pipeline_mode<synchronous>, transform_indices = @transform_10, window_bounds = array<i64: 1, 512>}, {pipeline_mode = #tpu.pipeline_mode<synchronous>, transform_indices = @transform_11, window_bounds = array<i64: 512, 128>}, {pipeline_mode = #tpu.pipeline_mode<synchronous>, transform_indices = @transform_12, window_bounds = array<i64: 1, 128>}, {transform_indices = @transform_13, window_bounds = array<i64: 1, 8, 128>}]} {
    %c0 = arith.constant 0 : index
    %c0_0 = arith.constant 0 : index
    %c0_1 = arith.constant 0 : index
    %0 = vector.load %arg1[%c0, %c0_0, %c0_1] : memref<1x8x128xf32, #tpu.memory_space<vmem>>, vector<1x8x128xf32>
    %1 = vector.shape_cast %0 : vector<1x8x128xf32> to vector<8x128xf32>
    %c0_2 = arith.constant 0 : index
    %c0_3 = arith.constant 0 : index
    %2 = vector.load %arg2[%c0_2, %c0_3] : memref<1x128xf32, #tpu.memory_space<vmem>>, vector<1x128xf32>
    %c0_4 = arith.constant 0 : index
    %c0_5 = arith.constant 0 : index
    %3 = vector.load %arg3[%c0_4, %c0_5] : memref<1x128xf32, #tpu.memory_space<vmem>>, vector<1x128xf32>
    %cst = arith.constant dense<0.000000e+00> : vector<8xf32>
    %4 = vector.multi_reduction <add>, %1, %cst [1] : vector<8x128xf32> to vector<8xf32>
    %5 = vector.shape_cast %4 : vector<8xf32> to vector<8x1xf32>
    %cst_6 = arith.constant 1.280000e+02 : f32
    %6 = vector.broadcast %cst_6 : f32 to vector<8x1xf32>
    %7 = arith.divf %5, %6 : vector<8x1xf32>
    %8 = arith.mulf %1, %1 : vector<8x128xf32>
    %cst_7 = arith.constant dense<0.000000e+00> : vector<8xf32>
    %9 = vector.multi_reduction <add>, %8, %cst_7 [1] : vector<8x128xf32> to vector<8xf32>
    %10 = vector.shape_cast %9 : vector<8xf32> to vector<8x1xf32>
    %cst_8 = arith.constant 1.280000e+02 : f32
    %11 = vector.broadcast %cst_8 : f32 to vector<8x1xf32>
    %12 = arith.divf %10, %11 : vector<8x1xf32>
    %13 = arith.mulf %7, %7 : vector<8x1xf32>
    %14 = arith.subf %12, %13 : vector<8x1xf32>
    %cst_9 = arith.constant 0.000000e+00 : f32
    %15 = vector.broadcast %cst_9 : f32 to vector<8x1xf32>
    %16 = arith.maximumf %14, %15 : vector<8x1xf32>
    %17 = vector.broadcast %7 : vector<8x1xf32> to vector<8x128xf32>
    %18 = arith.subf %1, %17 : vector<8x128xf32>
    %cst_10 = arith.constant 9.99999997E-7 : f32
    %19 = vector.broadcast %cst_10 : f32 to vector<8x1xf32>
    %20 = arith.addf %16, %19 : vector<8x1xf32>
    %21 = math.rsqrt %20 : vector<8x1xf32>
    %22 = vector.broadcast %21 : vector<8x1xf32> to vector<8x128xf32>
    %23 = arith.mulf %18, %22 : vector<8x128xf32>
    %24 = vector.broadcast %2 : vector<1x128xf32> to vector<8x128xf32>
    %25 = arith.mulf %23, %24 : vector<8x128xf32>
    %26 = vector.broadcast %3 : vector<1x128xf32> to vector<8x128xf32>
    %27 = arith.addf %25, %26 : vector<8x128xf32>
    %c0_11 = arith.constant 0 : index
    %c0_12 = arith.constant 0 : index
    %28 = vector.load %arg4[%c0_11, %c0_12] : memref<64x8xbf16, #tpu.memory_space<vmem>>, vector<64x8xbf16>
    %29 = arith.truncf %27 : vector<8x128xf32> to vector<8x128xbf16>
    %cst_13 = arith.constant dense<0.000000e+00> : vector<64x128xf32>
    %30 = tpu.matmul %28, %29, %cst_13 {dimension_numbers = #tpu.dot_dimension_numbers<[1], [0], [0], [1], [0, 0, 1, 1], [], []>} : vector<64x8xbf16>, vector<8x128xbf16>, vector<64x128xf32> -> vector<64x128xf32>
    %c0_14 = arith.constant 0 : index
    %c0_15 = arith.constant 0 : index
    %31 = vector.load %arg5[%c0_14, %c0_15] : memref<64x1xf32, #tpu.memory_space<vmem>>, vector<64x1xf32>
    %32 = vector.broadcast %31 : vector<64x1xf32> to vector<64x128xf32>
    %33 = arith.addf %30, %32 : vector<64x128xf32>
    %34 = arith.mulf %33, %33 : vector<64x128xf32>
    %35 = arith.mulf %33, %34 : vector<64x128xf32>
    %cst_16 = arith.constant 4.471500e-02 : f32
    %36 = vector.broadcast %cst_16 : f32 to vector<64x128xf32>
    %37 = arith.mulf %36, %35 : vector<64x128xf32>
    %38 = arith.addf %33, %37 : vector<64x128xf32>
    %cst_17 = arith.constant 0.797884583 : f32
    %39 = vector.broadcast %cst_17 : f32 to vector<64x128xf32>
    %40 = arith.mulf %39, %38 : vector<64x128xf32>
    %41 = math.tanh %40 : vector<64x128xf32>
    %cst_18 = arith.constant 1.000000e+00 : f32
    %42 = vector.broadcast %cst_18 : f32 to vector<64x128xf32>
    %43 = arith.addf %42, %41 : vector<64x128xf32>
    %cst_19 = arith.constant 5.000000e-01 : f32
    %44 = vector.broadcast %cst_19 : f32 to vector<64x128xf32>
    %45 = arith.mulf %44, %43 : vector<64x128xf32>
    %46 = arith.mulf %33, %45 : vector<64x128xf32>
    %c0_20 = arith.constant 0 : index
    %c0_21 = arith.constant 0 : index
    %47 = vector.load %arg6[%c0_20, %c0_21] : memref<8x64xbf16, #tpu.memory_space<vmem>>, vector<8x64xbf16>
    %48 = arith.truncf %46 : vector<64x128xf32> to vector<64x128xbf16>
    %cst_22 = arith.constant dense<0.000000e+00> : vector<8x128xf32>
    %49 = tpu.matmul %47, %48, %cst_22 {dimension_numbers = #tpu.dot_dimension_numbers<[1], [0], [0], [1], [0, 0, 1, 1], [], []>} : vector<8x64xbf16>, vector<64x128xbf16>, vector<8x128xf32> -> vector<8x128xf32>
    %50 = arith.addf %1, %49 : vector<8x128xf32>
    %c0_23 = arith.constant 0 : index
    %c0_24 = arith.constant 0 : index
    %51 = vector.load %arg7[%c0_23, %c0_24] : memref<8x1xf32, #tpu.memory_space<vmem>>, vector<8x1xf32>
    %52 = vector.broadcast %51 : vector<8x1xf32> to vector<8x128xf32>
    %53 = arith.addf %50, %52 : vector<8x128xf32>
    %c0_25 = arith.constant 0 : index
    %c0_26 = arith.constant 0 : index
    %54 = vector.load %arg8[%c0_25, %c0_26] : memref<1x128xf32, #tpu.memory_space<vmem>>, vector<1x128xf32>
    %c0_27 = arith.constant 0 : index
    %c0_28 = arith.constant 0 : index
    %55 = vector.load %arg9[%c0_27, %c0_28] : memref<1x128xf32, #tpu.memory_space<vmem>>, vector<1x128xf32>
    %cst_29 = arith.constant dense<0.000000e+00> : vector<8xf32>
    %56 = vector.multi_reduction <add>, %53, %cst_29 [1] : vector<8x128xf32> to vector<8xf32>
    %57 = vector.shape_cast %56 : vector<8xf32> to vector<8x1xf32>
    %cst_30 = arith.constant 1.280000e+02 : f32
    %58 = vector.broadcast %cst_30 : f32 to vector<8x1xf32>
    %59 = arith.divf %57, %58 : vector<8x1xf32>
    %60 = arith.mulf %53, %53 : vector<8x128xf32>
    %cst_31 = arith.constant dense<0.000000e+00> : vector<8xf32>
    %61 = vector.multi_reduction <add>, %60, %cst_31 [1] : vector<8x128xf32> to vector<8xf32>
    %62 = vector.shape_cast %61 : vector<8xf32> to vector<8x1xf32>
    %cst_32 = arith.constant 1.280000e+02 : f32
    %63 = vector.broadcast %cst_32 : f32 to vector<8x1xf32>
    %64 = arith.divf %62, %63 : vector<8x1xf32>
    %65 = arith.mulf %59, %59 : vector<8x1xf32>
    %66 = arith.subf %64, %65 : vector<8x1xf32>
    %cst_33 = arith.constant 0.000000e+00 : f32
    %67 = vector.broadcast %cst_33 : f32 to vector<8x1xf32>
    %68 = arith.maximumf %66, %67 : vector<8x1xf32>
    %69 = vector.broadcast %59 : vector<8x1xf32> to vector<8x128xf32>
    %70 = arith.subf %53, %69 : vector<8x128xf32>
    %cst_34 = arith.constant 9.99999997E-7 : f32
    %71 = vector.broadcast %cst_34 : f32 to vector<8x1xf32>
    %72 = arith.addf %68, %71 : vector<8x1xf32>
    %73 = math.rsqrt %72 : vector<8x1xf32>
    %74 = vector.broadcast %73 : vector<8x1xf32> to vector<8x128xf32>
    %75 = arith.mulf %70, %74 : vector<8x128xf32>
    %76 = vector.broadcast %54 : vector<1x128xf32> to vector<8x128xf32>
    %77 = arith.mulf %75, %76 : vector<8x128xf32>
    %78 = vector.broadcast %55 : vector<1x128xf32> to vector<8x128xf32>
    %79 = arith.addf %77, %78 : vector<8x128xf32>
    %80 = arith.truncf %79 : vector<8x128xf32> to vector<8x128xbf16>
    %c0_35 = arith.constant 0 : index
    %c0_36 = arith.constant 0 : index
    %81 = vector.load %arg10[%c0_35, %c0_36] : memref<128x512xbf16, #tpu.memory_space<vmem>>, vector<128x512xbf16>
    %cst_37 = arith.constant dense<0.000000e+00> : vector<8x512xf32>
    %82 = tpu.matmul %80, %81, %cst_37 {dimension_numbers = #tpu.dot_dimension_numbers<[1], [0], [0], [1], [0, 0, 1, 1], [], []>} : vector<8x128xbf16>, vector<128x512xbf16>, vector<8x512xf32> -> vector<8x512xf32>
    %c0_38 = arith.constant 0 : index
    %c0_39 = arith.constant 0 : index
    %83 = vector.load %arg11[%c0_38, %c0_39] : memref<1x512xf32, #tpu.memory_space<vmem>>, vector<1x512xf32>
    %84 = vector.broadcast %83 : vector<1x512xf32> to vector<8x512xf32>
    %85 = arith.addf %82, %84 : vector<8x512xf32>
    %86 = arith.mulf %85, %85 : vector<8x512xf32>
    %87 = arith.mulf %85, %86 : vector<8x512xf32>
    %cst_40 = arith.constant 4.471500e-02 : f32
    %88 = vector.broadcast %cst_40 : f32 to vector<8x512xf32>
    %89 = arith.mulf %88, %87 : vector<8x512xf32>
    %90 = arith.addf %85, %89 : vector<8x512xf32>
    %cst_41 = arith.constant 0.797884583 : f32
    %91 = vector.broadcast %cst_41 : f32 to vector<8x512xf32>
    %92 = arith.mulf %91, %90 : vector<8x512xf32>
    %93 = math.tanh %92 : vector<8x512xf32>
    %cst_42 = arith.constant 1.000000e+00 : f32
    %94 = vector.broadcast %cst_42 : f32 to vector<8x512xf32>
    %95 = arith.addf %94, %93 : vector<8x512xf32>
    %cst_43 = arith.constant 5.000000e-01 : f32
    %96 = vector.broadcast %cst_43 : f32 to vector<8x512xf32>
    %97 = arith.mulf %96, %95 : vector<8x512xf32>
    %98 = arith.mulf %85, %97 : vector<8x512xf32>
    %99 = arith.truncf %98 : vector<8x512xf32> to vector<8x512xbf16>
    %c0_44 = arith.constant 0 : index
    %c0_45 = arith.constant 0 : index
    %100 = vector.load %arg12[%c0_44, %c0_45] : memref<512x128xbf16, #tpu.memory_space<vmem>>, vector<512x128xbf16>
    %cst_46 = arith.constant dense<0.000000e+00> : vector<8x128xf32>
    %101 = tpu.matmul %99, %100, %cst_46 {dimension_numbers = #tpu.dot_dimension_numbers<[1], [0], [0], [1], [0, 0, 1, 1], [], []>} : vector<8x512xbf16>, vector<512x128xbf16>, vector<8x128xf32> -> vector<8x128xf32>
    %c0_47 = arith.constant 0 : index
    %c0_48 = arith.constant 0 : index
    %102 = vector.load %arg13[%c0_47, %c0_48] : memref<1x128xf32, #tpu.memory_space<vmem>>, vector<1x128xf32>
    %103 = vector.broadcast %102 : vector<1x128xf32> to vector<8x128xf32>
    %104 = arith.addf %101, %103 : vector<8x128xf32>
    %105 = arith.addf %53, %104 : vector<8x128xf32>
    %c0_49 = arith.constant 0 : index
    %c0_50 = arith.constant 0 : index
    %c0_51 = arith.constant 0 : index
    %106 = vector.load %arg14[%c0_49, %c0_50, %c0_51] : memref<1x8x128xf32, #tpu.memory_space<vmem>>, vector<1x8x128xf32>
    %107 = vector.shape_cast %106 : vector<1x8x128xf32> to vector<8x128xf32>
    %108 = vector.shape_cast %105 : vector<8x128xf32> to vector<1x8x128xf32>
    tpu.vector_store %arg14[%c0_49, %c0_50, %c0_51], %108 {strides = array<i32>} : memref<1x8x128xf32, #tpu.memory_space<vmem>>, vector<1x8x128xf32>,
    return
  }
  func.func @transform_0(%arg0: i32) -> (i32, i32, i32) {
    %c0_i32 = arith.constant 0 : i32
    %c0_i32_0 = arith.constant 0 : i32
    %c0_i32_1 = arith.constant 0 : i32
    return %arg0, %c0_i32, %c0_i32_0 : i32, i32, i32
  }
  func.func @transform_1(%arg0: i32) -> (i32, i32) {
    %c0_i32 = arith.constant 0 : i32
    %c0_i32_0 = arith.constant 0 : i32
    %c0_i32_1 = arith.constant 0 : i32
    return %c0_i32, %c0_i32_0 : i32, i32
  }
  func.func @transform_2(%arg0: i32) -> (i32, i32) {
    %c0_i32 = arith.constant 0 : i32
    %c0_i32_0 = arith.constant 0 : i32
    %c0_i32_1 = arith.constant 0 : i32
    return %c0_i32, %c0_i32_0 : i32, i32
  }
  func.func @transform_3(%arg0: i32) -> (i32, i32) {
    %c0_i32 = arith.constant 0 : i32
    %c0_i32_0 = arith.constant 0 : i32
    %c0_i32_1 = arith.constant 0 : i32
    return %c0_i32, %c0_i32_0 : i32, i32
  }
  func.func @transform_4(%arg0: i32) -> (i32, i32) {
    %c0_i32 = arith.constant 0 : i32
    %c0_i32_0 = arith.constant 0 : i32
    %c0_i32_1 = arith.constant 0 : i32
    return %c0_i32, %c0_i32_0 : i32, i32
  }
  func.func @transform_5(%arg0: i32) -> (i32, i32) {
    %c0_i32 = arith.constant 0 : i32
    %c0_i32_0 = arith.constant 0 : i32
    %c0_i32_1 = arith.constant 0 : i32
    return %c0_i32, %c0_i32_0 : i32, i32
  }
  func.func @transform_6(%arg0: i32) -> (i32, i32) {
    %c0_i32 = arith.constant 0 : i32
    %c0_i32_0 = arith.constant 0 : i32
    %c0_i32_1 = arith.constant 0 : i32
    return %c0_i32, %c0_i32_0 : i32, i32
  }
  func.func @transform_7(%arg0: i32) -> (i32, i32) {
    %c0_i32 = arith.constant 0 : i32
    %c0_i32_0 = arith.constant 0 : i32
    %c0_i32_1 = arith.constant 0 : i32
    return %c0_i32, %c0_i32_0 : i32, i32
  }
  func.func @transform_8(%arg0: i32) -> (i32, i32) {
    %c0_i32 = arith.constant 0 : i32
    %c0_i32_0 = arith.constant 0 : i32
    %c0_i32_1 = arith.constant 0 : i32
    return %c0_i32, %c0_i32_0 : i32, i32
  }
  func.func @transform_9(%arg0: i32) -> (i32, i32) {
    %c0_i32 = arith.constant 0 : i32
    %c0_i32_0 = arith.constant 0 : i32
    %c0_i32_1 = arith.constant 0 : i32
    return %c0_i32, %c0_i32_0 : i32, i32
  }
  func.func @transform_10(%arg0: i32) -> (i32, i32) {
    %c0_i32 = arith.constant 0 : i32
    %c0_i32_0 = arith.constant 0 : i32
    %c0_i32_1 = arith.constant 0 : i32
    return %c0_i32, %c0_i32_0 : i32, i32
  }
  func.func @transform_11(%arg0: i32) -> (i32, i32) {
    %c0_i32 = arith.constant 0 : i32
    %c0_i32_0 = arith.constant 0 : i32
    %c0_i32_1 = arith.constant 0 : i32
    return %c0_i32, %c0_i32_0 : i32, i32
  }
  func.func @transform_12(%arg0: i32) -> (i32, i32) {
    %c0_i32 = arith.constant 0 : i32
    %c0_i32_0 = arith.constant 0 : i32
    %c0_i32_1 = arith.constant 0 : i32
    return %c0_i32, %c0_i32_0 : i32, i32
  }
  func.func @transform_13(%arg0: i32) -> (i32, i32, i32) {
    %c0_i32 = arith.constant 0 : i32
    %c0_i32_0 = arith.constant 0 : i32
    %c0_i32_1 = arith.constant 0 : i32
    return %arg0, %c0_i32, %c0_i32_0 : i32, i32, i32
  }
}

</mosaic_0001>

<bundles_post_ra>
// kernel: tpu_custom_call.1
= control target key start
LH: loop header
LB: loop body
LE: loop exit
PB: predicated region body
PF: predicated region fallthrough
CT: control target
= control target key end

     0   :  { %s2388_s0 = inlined_call_operand.vmem [shape: f32[2,8,128], index: 0, kind: input, shape index: {}]   ;;  %s2389_s1 = inlined_call_operand.vmem [shape: f32[1,128], index: 1, kind: input, shape index: {}]   ;;  %s2390_s2 = inlined_call_operand.vmem [shape: f32[1,128], index: 2, kind: input, shape index: {}]   ;;  %s2391_s3 = inlined_call_operand.vmem [shape: bf16[64,8], index: 3, kind: input, shape index: {}]   ;;  %s2392_s4 = inlined_call_operand.vmem [shape: f32[64,1], index: 4, kind: input, shape index: {}]   ;;  %s2393_s5 = inlined_call_operand.vmem [shape: bf16[8,64], index: 5, kind: input, shape index: {}]   ;;  %s2394_s6 = inlined_call_operand.vmem [shape: f32[8,1], index: 6, kind: input, shape index: {}]   ;;  %s2395_s7 = inlined_call_operand.vmem [shape: f32[1,128], index: 7, kind: input, shape index: {}]   ;;  %s2396_s8 = inlined_call_operand.vmem [shape: f32[1,128], index: 8, kind: input, shape index: {}]   ;;  %s2397_s9 = inlined_call_operand.hbm [shape: bf16[128,512], index: 9, kind: input, shape index: {}]   ;;  %s2398_s10 = inlined_call_operand.vmem [shape: f32[1,512], index: 10, kind: input, shape index: {}]   ;;  %s2399_s11 = inlined_call_operand.hbm [shape: bf16[512,128], index: 11, kind: input, shape index: {}]   ;;  %s2400_s12 = inlined_call_operand.vmem [shape: f32[1,128], index: 12, kind: input, shape index: {}]   ;;  %s2401_s13 = inlined_call_operand.hbm [shape: f32[2,8,128], index: 13, kind: output, shape index: {}]  }
   0x1   :  { %2406 = sst [smem:[#allocation15_spill]] %s2397_s9 }
   0x2   :  { %18 = vsyncpa [#allocation3], 0 }
   0x3   :  { %19 = vsyncpa [#allocation6], 0 }
   0x4   :  { %20 = vsyncpa [#allocation4], 0 }
   0x5   :  { %22 = vsyncpa [#allocation4 + $0x1], 0  ;;  %s2149_s25 = smov 0   ;;  %s2151_s26 = smov 0  }
   0x6   :  { %s2153_s27 = smov 0   ;;  %s2155_s28 = smov 0  }
   0x7 LB: > { %2407 = sst [smem:[#allocation11_spill]] %s2065_s27  ;;  %s2170_s29 = sadd.s32 4294967295, %s2069_s28   ;;  %s2069_s28 = sphi %s2155_s28, %s2416_s28   ;;  %s2065_s27 = sphi %s2153_s27, %s2418_s27   ;;  %s2061_s26 = sphi %s2151_s26, %s2420_s26   ;;  %s2057_s25 = sphi %s2149_s25, %s2419_s25  }
   0x8   : > { %s1476_s30 = sadd.s32 4294967294, %s2069_s28   ;;  %s2174_s14 = sadd.s32 1, %s2069_s28  }
   0x9   : > { %2408 = sst [smem:[#allocation12_spill]] %s2174_s14  ;;  %s313_s15 = sadd.s32 1, %s2065_s27 }
   0xa   : > { %s310_s16 = ssub.s32 %s2069_s28, %s2174_s14  ;;  %p323_p0 = scmp.ne.s32.totalorder %s2065_s27, %s2061_s26 }
   0xb   : > { %p311_p1 = scmp.eq.s32.totalorder %s310_s16, 0  ;;  %p324_p2 = scmp.eq.s32.totalorder %s2170_s29, 1 }
   0xc   : > { %p329_p3 = scmp.ne.s32.totalorder %s2061_s26, %s2057_s25  ;;  %p330_p4 = scmp.eq.s32.totalorder %s1476_s30, 1 }
   0xd   : > { %s2185_s17 = scalar_select %p311_p1, %s2065_s27, %s313_s15  }
   0xe   : > { %p2187_p5 = por %p324_p2, %p323_p0  ;;  %p2191_p6 = por %p330_p4, %p329_p3 }
   0xf   : > { %2409 = sst [smem:[#allocation13_spill]] %s2185_s17  ;;  %p1477_p7 = scmp.ge.s32.totalorder %s2069_s28, 1 }
  0x10   : > { %s2411_s19 = scalar_select %p2191_p6, 1, 0 }
  0x11   : > { %p337_p8 = scmp.lt.s32.totalorder %s2069_s28, 3  ;;  %p1856_p9 = scmp.eq.s32.totalorder %s2170_s29, 0 }
  0x12   : > { %2412 = sst [smem:[#allocation14_spill]] %s2411_s19  ;;  %s2071_s24 = smov [#allocation2]  }
  0x13   : > { %p2198_p10 = pnand %p1477_p7, %p337_p8  ;;  %s2414_s9 = sld [smem:[#allocation15_spill]] }
  0x14   : > { %s374_s30 = sshll.u32 %s2071_s24, 4  ;;  %s389_s17 = sshll.u32 %s2399_s11, 4  ;;  %s375_s30 = int_to_ptr.vmem [resolvable:$true] %s374_s30  ;;  %s390_s17 = int_to_ptr.hbm [resolvable:$true] %s389_s17 }
  0x15   : > { %p1845_p11 = pneg %p2198_p10  ;;  %s2072_s27 = smov 256  }
  0x16   : > { %s2073_s14 = smov 16   ;;  %s2074_s19 = smov [#allocation5]  }
  0x17   : > { %p1846_p12 = pnand %p1856_p9, %p1845_p11  ;;  %s391_s21 = sshll.u32 %s2074_s19, 4  ;;  %s392_s21 = int_to_ptr.vmem [resolvable:$true] %s391_s21 }
  0x18   : > { %s2075_s22 = smov 64   ;;  %417 = sbr.rel (%p2198_p10) target bundleno = 1022 (0x3fe), region = 72 }
  0x19   : > { %s372_s23 = sshll.u32 %s2414_s9, 4  ;;  %s2076_s9 = smov 4   ;;  %s373_s23 = int_to_ptr.hbm [resolvable:$true] %s372_s23 }
  0x1a   : > { %1848 = dma.hbm_to_vmem [thread:$0]  (!%p1846_p12), %s373_s23, 4096, %s375_s30, [#allocation3], %s2072_s27, %s2072_s27, %s2073_s14  }
  0x1b   : > { %1851 = dma.hbm_to_vmem [thread:$0]  (!%p1846_p12), %s390_s17, 4096, %s392_s21, [#allocation6], %s2075_s22, %s2075_s22, %s2076_s9  }
  0x1d   : > { %2044 = dma.done.wait (%p1856_p9), [#allocation3], 4096  }
  0x1e   : > { %2046 = vsyncadd (%p1856_p9), [#allocation3], 4294963200 }
  0x1f   : > { %2048 = dma.done.wait (%p1856_p9), [#allocation6], 4096  }
  0x20   : > { %2050 = vsyncadd (%p1856_p9), [#allocation6], 4294963200  ;;  %p466_p13 = scmp.lt.s32.totalorder %s2170_s29, 1  ;;  %v2077_v2 = vmov 128.0   ;;  %v527_v8 = vld [vmem:[%s2392_s4 + $0x30] sm:$0xff]  ;;  %v2078_v9 = vmov 0  }
  0x21   : > { %1909 = vrcp.f32 %v2077_v2  ;;  %1901 = vset.pattern.permute.xlu1 %v2078_v9  ;;  %1902 = vset.pattern.permute.xlu2 %v2078_v9  ;;  %v528_v19 = vld [vmem:[%s2392_s4 + $0x38] sm:$0xff]  ;;  %v525_v26 = vld [vmem:[%s2392_s4 + $0x20] sm:$0xff]  ;;  %v522_v27 = vld [vmem:[%s2392_s4 + $0x8] sm:$0xff]  ;;  %vm602_vm4 = vcmask 1043456   ;;  %vm589_vm5 = vcmask 64512   ;;  %vm712_vm6 = vcmask 523264  }
  0x22   : > { %s467_s27 = scalar_select %p466_p13, %s2170_s29, 1  ;;  %561 = vperm.xlu1 %1901, %v527_v8   ;;  %1903 = vset.pattern.permute.xlu0 %v2078_v9  ;;  %v524_v20 = vld [vmem:[%s2392_s4 + $0x18] sm:$0xff]  ;;  %v523_v29 = vld [vmem:[%s2392_s4 + $0x10] sm:$0xff]  ;;  %v1904_v31 = vld [vmem:[%s2389_s1] ss:$0 sm:$0xff] }
  0x23   : > { %551 = vperm.xlu2 %1902, %v525_v26   ;;  %v1905_v34 = vld [vmem:[%s2390_s2] ss:$0 sm:$0xff]  ;;  %v526_v36 = vld [vmem:[%s2392_s4 + $0x28] sm:$0xff]  ;;  %v1769_v44 = vld [vmem:[%s2391_s3 + $0x10] sm:$0xff]  ;;  %s463_s23 = sand.u32 1, %s2061_s26   ;;  %s1764_s30 = sshll.u32 %s2170_s29, 3 }
  0x24   : > { %s1485_s9 = sshll.u32 %s467_s27, 3  ;;  %v1767_v40 = vld [vmem:[%s2391_s3] sm:$0xff]  ;;  %v1768_v42 = vld [vmem:[%s2391_s3 + $0x8] sm:$0xff]  ;;  %v1770_v45 = vld [vmem:[%s2391_s3 + $0x18] sm:$0xff]  ;;  %s1484_s24 = sshll.u32 %s463_s23, 3 }
  0x25   : > { %s469_s19 = scalar_lea.vmem %s2388_s0, %s1485_s9  ;;  %v521_v41 = vld [vmem:[%s2392_s4] sm:$0xff]  ;;  %s1390_s21 = scalar_lea.hbm %s2401_s13, %s1764_s30 }
  0x26   : > { %v2227_v0 = vld [vmem:[%s469_s19] sm:$0xff]  ;;  %s465_s22 = scalar_lea.vmem [#allocation7], %s1484_s24  ;;  %s1394_s9 = sshll.u32 %s1390_s21, 4  ;;  %s1395_s9 = int_to_ptr.hbm [resolvable:$true] %s1394_s9 }
  0x27   : > { %474 = vadd.xlane.f32.xlu0 %v2227_v0  ;;  %v484_v1 = vmul.f32 %v2227_v0, %v2227_v0  ;;  %v1910_v3 = vpop.eup %1909  ;;  %v730_v43 = vld [vmem:[%s2394_s6] sm:$0xff]  ;;  %s1392_s27 = sshll.u32 %s465_s22, 4  ;;  %s1380_s14 = scalar_lea.sflag [#allocation4], %s463_s23  ;;  %s1393_s27 = int_to_ptr.vmem [resolvable:$true] %s1392_s27 }
  0x28   : > { %v477_v4 = vmul.f32 128.0, %v1910_v3  ;;  %vm481_vm0 = vweird.f32 %v1910_v3  ;;  %s2013_s17 = sshra.s32 %s1395_s9, 4  ;;  %s2019_s24 = scalar_lea.hbm %s2401_s13, 16  ;;  %s2014_s17 = int_to_ptr.hbm [resolvable:$true] %s2013_s17 }
  0x29   : > { %s2015_s29 = scalar_lea.hbm %s2014_s17, 8  ;;  %p2020_p3 = scmp.lt.s32.totalorder %s2014_s17, %s2401_s13 }
  0x2a   : > { %v478_v5 = vsub.f32 1.0, %v477_v4  ;;  %566 = vperm.xlu1 %1901, %v528_v19   ;;  %p2016_p0 = scmp.ne.s32.totalorder %s2014_s17, %s2015_s29  ;;  %p2021_p4 = scmp.lt.s32.totalorder %s2019_s24, %s2015_s29 }
  0x2b   : > { %556 = vperm.xlu2 %1902, %v526_v36  }
  0x2c   : > { %v479_v6 = vmul.f32 %v1910_v3, %v478_v5  ;;  %p2017_p1 = pnand %p2016_p0, %p2187_p5  ;;  %p2022_p7 = por %p2021_p4, %p2020_p3 }
  0x2e   : > { %v480_v7 = vadd.f32 %v1910_v3, %v479_v6  ;;  %p2018_p2 = pneg %p2017_p1 }
  0x2f   : > { %485 = vadd.xlane.f32.xlu0 %v484_v1 }
  0x30   : > { %v2235_v11 = vsel %vm481_vm0, %v1910_v3, %v480_v7  ;;  %p2023_p8 = pnand %p2022_p7, %p2018_p2 }
  0x32   : > { %546 = vperm.xlu1 %1901, %v524_v20  }
  0x33   : > { %531 = vperm.xlu2 %1902, %v521_v41  }
  0x3a   : > { %536 = vperm.xlu1 %1901, %v522_v27  }
  0x3b   : > { %733 = vperm.xlu2 %1902, %v730_v43  }
  0x43   : > { %541 = vperm.xlu0 %1903, %v523_v29  }
  0x7d   : > { %v552_v52 = vpop.permute.xlu2 %551 }
  0x85   : > { %v557_v55 = vpop.permute.xlu2 %556 }
  0x8d   : > { %v532_v63 = vpop.permute.xlu2 %531 }
  0x94   : > { %v562_v48 = vpop.permute.xlu1 %561 }
  0x9a   : > { %v475_v10 = vpop.xlane.xlu0 %474 }
  0x9b   : > { %v483_v12 = vmul.f32 %v2235_v11, %v475_v10 }
  0x9c   : > { %v567_v51 = vpop.permute.xlu1 %566 }
  0x9d   : > { %v488_v14 = vmul.f32 %v483_v12, %v483_v12  ;;  %v491_v30 = vsub.f32 %v2227_v0, %v483_v12 }
  0xa2   : > { %v486_v13 = vpop.xlane.xlu0 %485 }
  0xa3   : > { %v487_v15 = vmul.f32 %v486_v13, %v2235_v11 }
  0xa4   : > { %v547_v54 = vpop.permute.xlu1 %546 }
  0xa5   : > { %v489_v16 = vsub.f32 %v487_v15, %v488_v14 }
  0xa7   : > { %v490_v17 = vmax.f32 %v489_v16, 0.0 }
  0xa9   : > { %v492_v18 = vadd.f32 1e-06, %v490_v17 }
  0xab   : > { %1911 = vrsqrt.f32 %v492_v18  ;;  %vm499_vm2 = vweird.f32 %v492_v18 }
  0xac   : > { %v537_v62 = vpop.permute.xlu1 %536 }
  0xb1   : > { %v1912_v21 = vpop.eup %1911 }
  0xb2   : > { %v494_v22 = vmul.f32 %v1912_v21, %v492_v18  ;;  %vm500_vm1 = vweird.f32 %v1912_v21 }
  0xb3   : > { %vm501_vm3 = vmor %vm499_vm2, %vm500_vm1 }
  0xb4   : > { %v495_v23 = vmul.f32 %v1912_v21, %v494_v22 }
  0xb5   : > { %v542_v59 = vpop.permute.xlu0 %541 }
  0xb6   : > { %v496_v24 = vmul.f32 0.5, %v495_v23 }
  0xb8   : > { %v497_v25 = vsub.f32 1.5, %v496_v24 }
  0xba   : > { %v498_v28 = vmul.f32 %v1912_v21, %v497_v25 }
  0xbc   : > { %v502_v32 = vsel %vm501_vm3, %v1912_v21, %v498_v28 }
  0xbd   : > { %v503_v33 = vmul.f32 %v502_v32, %v491_v30 }
  0xbf   : > { %v507_v35 = vmul.f32 %v1904_v31, %v503_v33 }
  0xc1   : > { %v511_v37 = vadd.f32 %v1905_v34, %v507_v35 }
  0xc3   : > { %v520_v38 = vpack.c.bf16 %v511_v37, %v511_v37 }
  0xc5   : > { %v604_v39 = vsel %vm602_vm4, %v520_v38, 0 }
  0xc6   : > { %613 = vmatpush.bf16.msra.mxu0 %v604_v39 }
  0xc9   : > { %1502 = vmatmul.msk.bf16.vlgmr.msra.gmra.mxu0 %vm589_vm5, %v1767_v40 }
  0xd9   : > { %1503 = vmatmul.msk.bf16.gmra.mxu0 %vm589_vm5, %v1768_v42 }
  0xe9   : > { %1504 = vmatmul.msk.bf16.gmra.mxu0 %vm589_vm5, %v1769_v44 }
  0xf9   : > { %1505 = vmatmul.msk.bf16.gmra.mxu0 %vm589_vm5, %v1770_v45 }
 0x146   : > { %v615_v46 = vpop.f32.mrf.mxu0 }
 0x147   : > { %v2301_v8 = vadd.f32 %v615_v46, %v532_v63 }
 0x149   : > { %v635_v17 = vmul.f32 %v2301_v8, %v2301_v8 }
 0x14b   : > { %v643_v27 = vmul.f32 %v635_v17, %v2301_v8 }
 0x14d   : > { %v651_v36 = vmul.f32 0.044715, %v643_v27  ;;  %v1801_v27 = vld [vmem:[#allocation2 + $0xec] sm:$0xf0] }
 0x14e   : > { %v617_v47 = vpop.f32.mrf.mxu0 }
 0x14f   : > { %v2296_v5 = vadd.f32 %v617_v47, %v537_v62  ;;  %v659_v43 = vadd.f32 %v651_v36, %v2301_v8  ;;  %v1793_v36 = vld [vmem:[#allocation2 + $0xac] sm:$0xf0] }
 0x151   : > { %v636_v14 = vmul.f32 %v2296_v5, %v2296_v5 }
 0x153   : > { %v644_v23 = vmul.f32 %v636_v14, %v2296_v5 }
 0x155   : > { %v652_v33 = vmul.f32 0.044715, %v644_v23 }
 0x156   : > { %v620_v49 = vpop.f32.mrf.mxu0 }
 0x157   : > { %v2290_v1 = vadd.f32 %v620_v49, %v542_v59  ;;  %v660_v41 = vadd.f32 %v652_v33, %v2296_v5  ;;  %v667_v49 = vmul.f32 0.7978846, %v659_v43 }
 0x159   : > { %v637_v9 = vmul.f32 %v2290_v1, %v2290_v1  ;;  %v668_v47 = vmul.f32 0.7978846, %v660_v41  ;;  %v1799_v41 = vld [vmem:[#allocation2 + $0xe4] sm:$0xf] }
 0x15b   : > { %v645_v18 = vmul.f32 %v637_v9, %v2290_v1 }
 0x15d   : > { %v653_v28 = vmul.f32 0.044715, %v645_v18 }
 0x15e   : > { %v622_v50 = vpop.f32.mrf.mxu0 }
 0x15f   : > { %v2286_v60 = vadd.f32 %v622_v50, %v547_v54  ;;  %v661_v37 = vadd.f32 %v653_v28, %v2290_v1  ;;  %v1605_v28 = vld [vmem:[#allocation2 + $0xc0] sm:$0xf] }
 0x161   : > { %v638_v3 = vmul.f32 %v2286_v60, %v2286_v60  ;;  %v669_v45 = vmul.f32 0.7978846, %v661_v37 }
 0x163   : > { %v646_v13 = vmul.f32 %v638_v3, %v2286_v60 }
 0x165   : > { %v654_v21 = vmul.f32 0.044715, %v646_v13 }
 0x166   : > { %v625_v53 = vpop.f32.mrf.mxu0 }
 0x167   : > { %v2284_v58 = vadd.f32 %v625_v53, %v552_v52  ;;  %v662_v32 = vadd.f32 %v654_v21, %v2286_v60 }
 0x169   : > { %v639_v2 = vmul.f32 %v2284_v58, %v2284_v58  ;;  %v670_v40 = vmul.f32 0.7978846, %v662_v32 }
 0x16b   : > { %v647_v10 = vmul.f32 %v639_v2, %v2284_v58 }
 0x16d   : > { %v655_v19 = vmul.f32 0.044715, %v647_v10 }
 0x16e   : > { %v627_v56 = vpop.f32.mrf.mxu0 }
 0x16f   : > { %v2282_v57 = vadd.f32 %v627_v56, %v557_v55  ;;  %v663_v29 = vadd.f32 %v655_v19, %v2284_v58 }
 0x171   : > { %v640_v61 = vmul.f32 %v2282_v57, %v2282_v57  ;;  %v671_v39 = vmul.f32 0.7978846, %v663_v29 }
 0x173   : > { %v648_v6 = vmul.f32 %v640_v61, %v2282_v57 }
 0x175   : > { %v656_v15 = vmul.f32 0.044715, %v648_v6 }
 0x176   : > { %v630_v4 = vpop.f32.mrf.mxu0 }
 0x177   : > { %v2299_v7 = vadd.f32 %v630_v4, %v562_v48  ;;  %v664_v24 = vadd.f32 %v656_v15, %v2282_v57 }
 0x179   : > { %v641_v12 = vmul.f32 %v2299_v7, %v2299_v7  ;;  %v672_v35 = vmul.f32 0.7978846, %v664_v24 }
 0x17b   : > { %v649_v16 = vmul.f32 %v641_v12, %v2299_v7 }
 0x17d   : > { %v657_v20 = vmul.f32 0.044715, %v649_v16 }
 0x17e   : > { %v632_v22 = vpop.f32.mrf.mxu0 }
 0x17f   : > { %v633_v25 = vadd.f32 %v632_v22, %v567_v51  ;;  %v665_v26 = vadd.f32 %v657_v20, %v2299_v7 }
 0x181   : > { %v642_v30 = vmul.f32 %v633_v25, %v633_v25  ;;  %v673_v31 = vmul.f32 0.7978846, %v665_v26 }
 0x183   : > { %v650_v34 = vmul.f32 %v642_v30, %v633_v25  ;;  %1913 = vtanh.f32 %v673_v31 }
 0x184   : > { %1915 = vtanh.f32 %v672_v35  ;;  %v1589_v35 = vld [vmem:[#allocation2 + $0xa0] sm:$0xf] }
 0x185   : > { %v658_v38 = vmul.f32 0.044715, %v650_v34  ;;  %1917 = vtanh.f32 %v671_v39  ;;  %v1590_v37 = vor.u32 %v1793_v36, %v1589_v35  ;;  %v1789_v39 = vld [vmem:[#allocation2 + $0x8c] sm:$0xf0]  ;;  %v1533_v35 = vld [vmem:[#allocation2 + $0x28] sm:$0xf] }
 0x186   : > { %1919 = vtanh.f32 %v670_v40 }
 0x187   : > { %v666_v42 = vadd.f32 %v658_v38, %v633_v25  ;;  %v1573_v38 = vld [vmem:[#allocation2 + $0x80] sm:$0xf] }
 0x188   : > { %v1574_v40 = vor.u32 %v1789_v39, %v1573_v38  ;;  %v1792_v38 = vld [vmem:[#allocation2 + $0xac] sm:$0xf]  ;;  %v1599_v39 = vld [vmem:[#allocation2 + $0xb8] sm:$0xf0] }
 0x189   : > { %v674_v44 = vmul.f32 0.7978846, %v666_v42  ;;  %v1914_v46 = vpop.eup %1913  ;;  %v1623_v42 = vld [vmem:[#allocation2 + $0xf0] sm:$0xf0] }
 0x18a   : > { %v1916_v48 = vpop.eup %1915  ;;  %v689_v50 = vadd.f32 1.0, %v1914_v46  ;;  %v1626_v43 = vor.u32 %v1799_v41, %v1623_v42  ;;  %v1557_v46 = vld [vmem:[#allocation2 + $0x60] sm:$0xf]  ;;  %v1602_v41 = vor.u32 %v1792_v38, %v1599_v39  ;;  %v1771_v42 = vld [vmem:[#allocation2 + $0x4] sm:$0xf]  ;;  %v1834_v38 = vld [vmem:[#allocation5 + $0xf8] sm:$0xff] }
 0x18b   : > { %1921 = vtanh.f32 %v674_v44  ;;  %v1918_v51 = vpop.eup %1917  ;;  %v688_v53 = vadd.f32 1.0, %v1916_v48  ;;  %v1802_v44 = vld [vmem:[#allocation2 + $0xf4] sm:$0xf0]  ;;  %v1820_v39 = vld [vmem:[#allocation5 + $0x88] sm:$0xff] }
 0x18c   : > { %1923 = vtanh.f32 %v669_v45  ;;  %v1920_v52 = vpop.eup %1919  ;;  %v697_v56 = vmul.f32 0.5, %v689_v50  ;;  %v687_v59 = vadd.f32 1.0, %v1918_v51  ;;  %986 = vmatpush.bf16.msra.mxu3 %v1626_v43  ;;  %v1607_v50 = vld [vmem:[#allocation2 + $0xd0] sm:$0xf0]  ;;  %v1613_v51 = vld [vmem:[#allocation2 + $0xc8] sm:$0xf] }
 0x18d   : > { %1925 = vtanh.f32 %v668_v47  ;;  %v696_v63 = vmul.f32 0.5, %v688_v53  ;;  %v686_v2 = vadd.f32 1.0, %v1920_v52  ;;  %v1785_v47 = vld [vmem:[#allocation2 + $0x6c] sm:$0xf0]  ;;  %v1798_v53 = vld [vmem:[#allocation2 + $0xd4] sm:$0xf0] }
 0x18e   : > { %1927 = vtanh.f32 %v667_v49  ;;  %v705_v4 = vmul.f32 %v697_v56, %v2299_v7  ;;  %v695_v9 = vmul.f32 0.5, %v687_v59  ;;  %v1558_v48 = vor.u32 %v1785_v47, %v1557_v46  ;;  %v1795_v49 = vld [vmem:[#allocation2 + $0xc4] sm:$0xf]  ;;  %v1781_v56 = vld [vmem:[#allocation2 + $0x4c] sm:$0xf0] }
 0x18f   : > { %v704_v14 = vmul.f32 %v696_v63, %v2282_v57  ;;  %v694_v15 = vmul.f32 0.5, %v686_v2  ;;  %v1610_v52 = vor.u32 %v1795_v49, %v1607_v50  ;;  %v1597_v63 = vld [vmem:[#allocation2 + $0xa8] sm:$0xf]  ;;  %v1788_v46 = vld [vmem:[#allocation2 + $0x8c] sm:$0xf] }
 0x190   : > { %v703_v17 = vmul.f32 %v695_v9, %v2284_v58  ;;  %v707_v58 = vld [vmem:[%s2393_s5] sm:$0xf]  ;;  %v1777_v9 = vld [vmem:[#allocation2 + $0x2c] sm:$0xf0]  ;;  %v1517_v43 = vld [vmem:[#allocation2 + $0x8] sm:$0xf] }
 0x191   : > { %v1922_v54 = vpop.eup %1921  ;;  %v702_v21 = vmul.f32 %v694_v15, %v2286_v60  ;;  %v1621_v60 = vld [vmem:[#allocation2 + $0xe0] sm:$0xf]  ;;  %987 = vmatpush.bf16.msra.mxu3 %v1610_v52  ;;  %v1583_v47 = vld [vmem:[#allocation2 + $0x98] sm:$0xf0] }
 0x192   : > { %v690_v55 = vadd.f32 1.0, %v1922_v54  ;;  %v1924_v61 = vpop.eup %1923  ;;  %v710_v20 = vpack.c.bf16 %v704_v14, %v703_v17  ;;  %v1622_v29 = vor.u32 %v1801_v27, %v1621_v60  ;;  %v1614_v54 = vor.u32 %v1798_v53, %v1613_v51  ;;  %v1581_v14 = vld [vmem:[#allocation2 + $0x88] sm:$0xf]  ;;  %v1779_v60 = vld [vmem:[#allocation2 + $0x44] sm:$0xf] }
 0x193   : > { %v1926_v3 = vpop.eup %1925  ;;  %v685_v10 = vadd.f32 1.0, %v1924_v61  ;;  %v1791_v61 = vld [vmem:[#allocation2 + $0xa4] sm:$0xf]  ;;  %v1543_v27 = vld [vmem:[#allocation2 + $0x50] sm:$0xf0]  ;;  %v1586_v49 = vor.u32 %v1788_v46, %v1583_v47 }
 0x194   : > { %v698_v62 = vmul.f32 0.5, %v690_v55  ;;  %v1928_v12 = vpop.eup %1927  ;;  %v684_v16 = vadd.f32 1.0, %v1926_v3  ;;  %973 = vmatpush.bf16.msra.mxu2 %v1622_v29  ;;  %v1541_v55 = vld [vmem:[#allocation2 + $0x40] sm:$0xf]  ;;  %v1794_v3 = vld [vmem:[#allocation2 + $0xb4] sm:$0xf0]  ;;  %v1546_v29 = vor.u32 %v1779_v60, %v1543_v27 }
 0x195   : > { %v693_v18 = vmul.f32 0.5, %v685_v10  ;;  %v683_v19 = vadd.f32 1.0, %v1928_v12  ;;  %v1542_v59 = vor.u32 %v1781_v56, %v1541_v55  ;;  %v1787_v12 = vld [vmem:[#allocation2 + $0x84] sm:$0xf]  ;;  %v1784_v55 = vld [vmem:[#allocation2 + $0x6c] sm:$0xf] }
 0x196   : > { %v706_v6 = vmul.f32 %v698_v62, %v633_v25  ;;  %v692_v22 = vmul.f32 0.5, %v684_v16  ;;  %v1591_v62 = vld [vmem:[#allocation2 + $0xb0] sm:$0xf0]  ;;  %v1790_v16 = vld [vmem:[#allocation2 + $0x94] sm:$0xf0] }
 0x197   : > { %v701_v7 = vmul.f32 %v693_v18, %v2290_v1  ;;  %v691_v23 = vmul.f32 0.5, %v683_v19  ;;  %v1797_v1 = vld [vmem:[#allocation2 + $0xcc] sm:$0xf0]  ;;  %v1594_v2 = vor.u32 %v1791_v61, %v1591_v62  ;;  %v1582_v17 = vor.u32 %v1790_v16, %v1581_v14  ;;  %v1509_v18 = vld [vmem:[#allocation2] sm:$0xf] }
 0x198   : > { %v711_v13 = vpack.c.bf16 %v706_v6, %v705_v4  ;;  %v700_v25 = vmul.f32 %v692_v22, %v2296_v5  ;;  %v1606_v30 = vor.u32 %v1797_v1, %v1605_v28  ;;  %v1598_v4 = vor.u32 %v1794_v3, %v1597_v63  ;;  %v1525_v6 = vld [vmem:[#allocation2 + $0x20] sm:$0xf]  ;;  %v1773_v19 = vld [vmem:[#allocation2 + $0xc] sm:$0xf0]  ;;  %v1559_v22 = vld [vmem:[#allocation2 + $0x70] sm:$0xf0] }
 0x199   : > { %v709_v24 = vpack.c.bf16 %v702_v21, %v701_v7  ;;  %v699_v57 = vmul.f32 %v691_v23, %v2301_v8  ;;  %v734_v8 = vpop.permute.xlu2 %733  ;;  %988 = vmatpush.bf16.msra.mxu3 %v1594_v2  ;;  %v1526_v10 = vor.u32 %v1777_v9, %v1525_v6  ;;  %v1783_v21 = vld [vmem:[#allocation2 + $0x64] sm:$0xf]  ;;  %v1565_v7 = vld [vmem:[#allocation2 + $0x68] sm:$0xf]  ;;  %v1782_v1 = vld [vmem:[#allocation2 + $0x54] sm:$0xf0] }
 0x19a   : > { %720 = vmatpush.bf16.msra.mxu1 %v711_v13  ;;  %974 = vmatpush.bf16.msra.mxu2 %v1606_v30  ;;  %v1575_v13 = vld [vmem:[#allocation2 + $0x90] sm:$0xf0]  ;;  %v1562_v23 = vor.u32 %v1783_v21, %v1559_v22  ;;  %v1549_v28 = vld [vmem:[#allocation2 + $0x48] sm:$0xf]  ;;  %v1796_v30 = vld [vmem:[#allocation2 + $0xcc] sm:$0xf] }
 0x19b   : > { %v708_v26 = vpack.c.bf16 %v700_v25, %v699_v57  ;;  %v1578_v15 = vor.u32 %v1787_v12, %v1575_v13  ;;  %v1800_v25 = vld [vmem:[#allocation2 + $0xec] sm:$0xf]  ;;  %v1631_v57 = vld [vmem:[#allocation2 + $0xf8] sm:$0xf0]  ;;  %v1825_v27 = vld [vmem:[#allocation5 + $0xb0] sm:$0xff] }
 0x19c   : > { %v1567_v56 = vld [vmem:[#allocation2 + $0x78] sm:$0xf0]  ;;  %v1780_v62 = vld [vmem:[#allocation2 + $0x4c] sm:$0xf]  ;;  %v803_v46 = vld [vmem:[%s2398_s10] sm:$0xf] }
 0x19d   : > { %989 = vmatpush.bf16.msra.mxu3 %v1578_v15  ;;  %v1570_v61 = vor.u32 %v1784_v55, %v1567_v56  ;;  %v1551_v63 = vld [vmem:[#allocation2 + $0x58] sm:$0xf0]  ;;  %v1772_v12 = vld [vmem:[#allocation2 + $0xc] sm:$0xf]  ;;  %v807_v47 = vperm.slane %v803_v46, 2  ;;  %v806_v55 = vperm.slane %v803_v46, 1 }
 0x19e   : > { %721 = vmatpush.bf16.msra.mxu1 %v710_v20  ;;  %975 = vmatpush.bf16.msra.mxu2 %v1590_v37  ;;  %v1510_v20 = vor.u32 %v1773_v19, %v1509_v18  ;;  %v1778_v37 = vld [vmem:[#allocation2 + $0x34] sm:$0xf0]  ;;  %v1554_v3 = vor.u32 %v1780_v62, %v1551_v63  ;;  %v1535_v6 = vld [vmem:[#allocation2 + $0x38] sm:$0xf0] }
 0x19f   : > { %v1519_v13 = vld [vmem:[#allocation2 + $0x18] sm:$0xf0] }
 0x1a0   : > { %v1826_v18 = vld [vmem:[#allocation5 + $0xb8] sm:$0xff] }
 0x1a1   : > { %990 = vmatpush.bf16.msra.mxu3 %v1562_v23  ;;  %v1906_v23 = vld [vmem:[%s2395_s7] ss:$0 sm:$0xff] }
 0x1a2   : > { %722 = vmatpush.bf16.msra.mxu1 %v709_v24  ;;  %976 = vmatpush.bf16.msra.mxu2 %v1574_v40  ;;  %v1786_v24 = vld [vmem:[#allocation2 + $0x74] sm:$0xf0]  ;;  %v1534_v40 = vor.u32 %v1778_v37, %v1533_v35  ;;  %v1821_v35 = vld [vmem:[#allocation5 + $0x90] sm:$0xff] }
 0x1a3   : > { %v1814_v37 = vld [vmem:[#allocation5 + $0x58] sm:$0xff] }
 0x1a5   : > { %991 = vmatpush.bf16.msra.mxu3 %v1546_v29  ;;  %v1824_v29 = vld [vmem:[#allocation5 + $0xa8] sm:$0xff] }
 0x1a6   : > { %723 = vmatpush.bf16.msra.mxu1 %v708_v26  ;;  %977 = vmatpush.bf16.msra.mxu2 %v1558_v48  ;;  %v1566_v26 = vor.u32 %v1786_v24, %v1565_v7 }
 0x1a9   : > { %1506 = vmatmul.msk.bf16.vlgmr.msra.gmra.mxu1 %vm712_vm6, %v707_v58  ;;  %v1634_v58 = vor.u32 %v1800_v25, %v1631_v57  ;;  %v1907_v57 = vld [vmem:[%s2396_s8] ss:$0 sm:$0xff] }
 0x1aa   : > { %978 = vmatpush.bf16.msra.mxu2 %v1542_v59 }
 0x1ae   : > { %979 = vmatpush.bf16.msra.mxu2 %v1526_v10 }
 0x1b2   : > { %980 = vmatpush.bf16.msra.mxu2 %v1510_v20  ;;  %v1817_v20 = vld [vmem:[#allocation5 + $0x70] sm:$0xff] }
 0x1b6   : > { %1012 = vmatpush.bf16.msrb.mxu2 %v1634_v58 }
 0x226   : > { %v725_v5 = vpop.f32.mrf.mxu1 }
 0x227   : > { %v729_v31 = vadd.f32 %v725_v5, %v2227_v0  ;;  %v1629_v0 = vld [vmem:[#allocation2 + $0xe8] sm:$0xf]  ;;  %v1615_v5 = vld [vmem:[#allocation2 + $0xd8] sm:$0xf0] }
 0x228   : > { %v1630_v45 = vor.u32 %v1802_v44, %v1629_v0  ;;  %v1511_v0 = vld [vmem:[#allocation2 + $0x10] sm:$0xf0] }
 0x229   : > { %v2335_v32 = vadd.f32 %v734_v8, %v729_v31  ;;  %v1550_v31 = vor.u32 %v1782_v1, %v1549_v28  ;;  %v1618_v8 = vor.u32 %v1796_v30, %v1615_v5  ;;  %v1514_v44 = vor.u32 %v1771_v42, %v1511_v0  ;;  %v1810_v28 = vld [vmem:[#allocation5 + $0x38] sm:$0xff]  ;;  %v1809_v1 = vld [vmem:[#allocation5 + $0x30] sm:$0xff]  ;;  %v1823_v30 = vld [vmem:[#allocation5 + $0xa0] sm:$0xff] }
 0x22a   : > { %999 = vmatpush.bf16.msrb.mxu1 %v1630_v45  ;;  %v1774_v45 = vld [vmem:[#allocation2 + $0x14] sm:$0xf0]  ;;  %v1816_v5 = vld [vmem:[#allocation5 + $0x68] sm:$0xff]  ;;  %v1833_v42 = vld [vmem:[#allocation5 + $0xf0] sm:$0xff] }
 0x22b   : > { %739 = vadd.xlane.f32.xlu1 %v2335_v32  ;;  %v742_v33 = vmul.f32 %v2335_v32, %v2335_v32  ;;  %1013 = vmatpush.bf16.msrb.mxu2 %v1618_v8  ;;  %v1518_v48 = vor.u32 %v1774_v45, %v1517_v43  ;;  %v1822_v8 = vld [vmem:[#allocation5 + $0x98] sm:$0xff]  ;;  %v1819_v0 = vld [vmem:[#allocation5 + $0x80] sm:$0xff]  ;;  %v1804_v43 = vld [vmem:[#allocation5 + $0x8] sm:$0xff] }
 0x22c   : > { %v1832_v45 = vld [vmem:[#allocation5 + $0xe8] sm:$0xff] }
 0x22d   : > { %743 = vadd.xlane.f32.xlu2 %v742_v33  ;;  %v1775_v33 = vld [vmem:[#allocation2 + $0x24] sm:$0xf] }
 0x22e   : > { %v727_v34 = vpop.f32.mrf.mxu1  ;;  %1000 = vmatpush.bf16.msrb.mxu1 %v1614_v54 }
 0x22f   : > { %v1527_v34 = vld [vmem:[#allocation2 + $0x30] sm:$0xf0]  ;;  %1014 = vmatpush.bf16.msrb.mxu2 %v1602_v41 }
 0x230   : > { %v1530_v36 = vor.u32 %v1775_v33, %v1527_v34  ;;  %v1815_v33 = vld [vmem:[#allocation5 + $0x60] sm:$0xff]  ;;  %v1813_v41 = vld [vmem:[#allocation5 + $0x50] sm:$0xff] }
 0x231   : > { %v1807_v34 = vld [vmem:[#allocation5 + $0x20] sm:$0xff] }
 0x232   : > { %1001 = vmatpush.bf16.msrb.mxu1 %v1598_v4  ;;  %992 = vmatpush.bf16.msra.mxu3 %v1530_v36  ;;  %v1776_v4 = vld [vmem:[#allocation2 + $0x2c] sm:$0xf]  ;;  %v1806_v36 = vld [vmem:[#allocation5 + $0x18] sm:$0xff] }
 0x233   : > { %1015 = vmatpush.bf16.msrb.mxu2 %v1586_v49  ;;  %v1538_v10 = vor.u32 %v1776_v4, %v1535_v6  ;;  %v1811_v49 = vld [vmem:[#allocation5 + $0x40] sm:$0xff] }
 0x236   : > { %1002 = vmatpush.bf16.msrb.mxu1 %v1582_v17  ;;  %993 = vmatpush.bf16.msra.mxu3 %v1514_v44  ;;  %v1818_v17 = vld [vmem:[#allocation5 + $0x78] sm:$0xff]  ;;  %v1812_v44 = vld [vmem:[#allocation5 + $0x48] sm:$0xff] }
 0x237   : > { %1016 = vmatpush.bf16.msrb.mxu2 %v1570_v61  ;;  %1338 = vmatpush.bf16.msrb.mxu0 %v1818_v17 }
 0x23a   : > { %1003 = vmatpush.bf16.msrb.mxu1 %v1566_v26  ;;  %1325 = vmatpush.bf16.msrb.mxu3 %v1810_v28 }
 0x23b   : > { %1017 = vmatpush.bf16.msrb.mxu2 %v1554_v3  ;;  %1339 = vmatpush.bf16.msrb.mxu0 %v1817_v20 }
 0x23e   : > { %1004 = vmatpush.bf16.msrb.mxu1 %v1550_v31  ;;  %1326 = vmatpush.bf16.msrb.mxu3 %v1809_v1  ;;  %v1808_v31 = vld [vmem:[#allocation5 + $0x28] sm:$0xff] }
 0x23f   : > { %1018 = vmatpush.bf16.msrb.mxu2 %v1538_v10  ;;  %1340 = vmatpush.bf16.msrb.mxu0 %v1816_v5 }
 0x242   : > { %1005 = vmatpush.bf16.msrb.mxu1 %v1534_v40  ;;  %1327 = vmatpush.bf16.msrb.mxu3 %v1808_v31  ;;  %v1805_v40 = vld [vmem:[#allocation5 + $0x10] sm:$0xff] }
 0x243   : > { %1341 = vmatpush.bf16.msrb.mxu0 %v1815_v33 }
 0x246   : > { %1006 = vmatpush.bf16.msrb.mxu1 %v1518_v48  ;;  %1328 = vmatpush.bf16.msrb.mxu3 %v1807_v34  ;;  %v1803_v48 = vld [vmem:[#allocation5] sm:$0xff] }
 0x247   : > { %1342 = vmatpush.bf16.msrb.mxu0 %v1814_v37 }
 0x24a   : > { %1351 = vmatpush.bf16.msra.mxu1 %v1826_v18  ;;  %1329 = vmatpush.bf16.msrb.mxu3 %v1806_v36  ;;  %v1827_v18 = vld [vmem:[#allocation5 + $0xc0] sm:$0xff] }
 0x24b   : > { %1343 = vmatpush.bf16.msrb.mxu0 %v1813_v41 }
 0x24e   : > { %1352 = vmatpush.bf16.msra.mxu1 %v1825_v27  ;;  %1330 = vmatpush.bf16.msrb.mxu3 %v1805_v40 }
 0x24f   : > { %1344 = vmatpush.bf16.msrb.mxu0 %v1812_v44 }
 0x252   : > { %1353 = vmatpush.bf16.msra.mxu1 %v1824_v29  ;;  %1331 = vmatpush.bf16.msrb.mxu3 %v1804_v43 }
 0x253   : > { %1345 = vmatpush.bf16.msrb.mxu0 %v1811_v49 }
 0x256   : > { %1354 = vmatpush.bf16.msra.mxu1 %v1823_v30  ;;  %1332 = vmatpush.bf16.msrb.mxu3 %v1803_v48 }
 0x25a   : > { %1355 = vmatpush.bf16.msra.mxu1 %v1822_v8 }
 0x25e   : > { %1356 = vmatpush.bf16.msra.mxu1 %v1821_v35 }
 0x262   : > { %1357 = vmatpush.bf16.msra.mxu1 %v1820_v39 }
 0x266   : > { %1358 = vmatpush.bf16.msra.mxu1 %v1819_v0 }
 0x29e   : > { %v740_v50 = vpop.xlane.xlu1 %739 }
 0x29f   : > { %v741_v51 = vmul.f32 %v740_v50, %v2235_v11  ;;  %v1831_v50 = vld [vmem:[#allocation5 + $0xe0] sm:$0xff] }
 0x2a0   : > { %v744_v52 = vpop.xlane.xlu2 %743 }
 0x2a1   : > { %v746_v53 = vmul.f32 %v741_v51, %v741_v51  ;;  %v745_v54 = vmul.f32 %v744_v52, %v2235_v11  ;;  %v1522_v11 = vor.u32 %v1772_v12, %v1519_v13  ;;  %v749_v7 = vsub.f32 %v2335_v32, %v741_v51  ;;  %v1828_v12 = vld [vmem:[#allocation5 + $0xc8] sm:$0xff] }
 0x2a3   : > { %v747_v59 = vsub.f32 %v745_v54, %v746_v53  ;;  %1019 = vmatpush.bf16.msrb.mxu2 %v1522_v11  ;;  %v1830_v53 = vld [vmem:[#allocation5 + $0xd8] sm:$0xff]  ;;  %v805_v54 = vperm.slane %v803_v46, 0 }
 0x2a5   : > { %v748_v2 = vmax.f32 %v747_v59, 0.0  ;;  %v1829_v59 = vld [vmem:[#allocation5 + $0xd0] sm:$0xff] }
 0x2a7   : > { %v750_v9 = vadd.f32 1e-06, %v748_v2 }
 0x2a9   : > { %1929 = vrsqrt.f32 %v750_v9  ;;  %vm757_vm8 = vweird.f32 %v750_v9 }
 0x2af   : > { %v1930_v14 = vpop.eup %1929 }
 0x2b0   : > { %v752_v15 = vmul.f32 %v1930_v14, %v750_v9  ;;  %vm758_vm7 = vweird.f32 %v1930_v14 }
 0x2b1   : > { %vm759_vm9 = vmor %vm757_vm8, %vm758_vm7 }
 0x2b2   : > { %v753_v16 = vmul.f32 %v1930_v14, %v752_v15 }
 0x2b4   : > { %v754_v19 = vmul.f32 0.5, %v753_v16 }
 0x2b6   : > { %v755_v21 = vsub.f32 1.5, %v754_v19 }
 0x2b8   : > { %v756_v22 = vmul.f32 %v1930_v14, %v755_v21 }
 0x2ba   : > { %v760_v24 = vsel %vm759_vm9, %v1930_v14, %v756_v22 }
 0x2bb   : > { %v761_v25 = vmul.f32 %v760_v24, %v749_v7  ;;  %v808_v24 = vperm.slane %v803_v46, 3 }
 0x2bd   : > { %v765_v26 = vmul.f32 %v1906_v23, %v761_v25 }
 0x2bf   : > { %v769_v58 = vadd.f32 %v1907_v57, %v765_v26 }
 0x2c1   : > { %v770_v60 = vpack.c.bf16 %v769_v58, %v769_v58 }
 0x2c3   : > { %981 = vmatmul.bf16.vlgmr.msra.gmra.mxu2 %v770_v60  ;;  %994 = vmatmul.bf16.vlgmr.msra.gmra.mxu3 %v770_v60 }
 0x2c4   : > { %1007 = vmatmul.bf16.vlgmr.msrb.gmra.mxu1 %v770_v60  ;;  %1364 = vmatpush.bf16.msra.mxu2 %v1834_v38 }
 0x2c8   : > { %1365 = vmatpush.bf16.msra.mxu2 %v1833_v42 }
 0x2cc   : > { %1366 = vmatpush.bf16.msra.mxu2 %v1832_v45 }
 0x2d0   : > { %1367 = vmatpush.bf16.msra.mxu2 %v1831_v50 }
 0x2d3   : > { %1020 = vmatmul.bf16.vlgmr.msrb.gmra.mxu2 %v770_v60 }
 0x2d4   : > { %1368 = vmatpush.bf16.msra.mxu2 %v1830_v53 }
 0x2d8   : > { %1369 = vmatpush.bf16.msra.mxu2 %v1829_v59 }
 0x2dc   : > { %1370 = vmatpush.bf16.msra.mxu2 %v1828_v12 }
 0x2e0   : > { %1371 = vmatpush.bf16.msra.mxu2 %v1827_v18 }
 0x341   : > { %v1008_v51 = vpop.f32.mrf.mxu1 }
 0x342   : > { %v1009_v52 = vadd.f32 %v1008_v51, %v807_v47  ;;  %v1908_v51 = vld [vmem:[%s2400_s12] ss:$0 sm:$0xff] }
 0x344   : > { %v1027_v56 = vmul.f32 %v1009_v52, %v1009_v52 }
 0x346   : > { %v1031_v61 = vmul.f32 %v1027_v56, %v1009_v52  ;;  %v982_v62 = vpop.f32.mrf.mxu2  ;;  %v995_v63 = vpop.f32.mrf.mxu3 }
 0x347   : > { %v983_v2 = vadd.f32 %v982_v62, %v805_v54  ;;  %v996_v3 = vadd.f32 %v995_v63, %v806_v55 }
 0x348   : > { %v1035_v4 = vmul.f32 0.044715, %v1031_v61 }
 0x349   : > { %v1025_v6 = vmul.f32 %v983_v2, %v983_v2  ;;  %v1026_v9 = vmul.f32 %v996_v3, %v996_v3  ;;  %v1010_v10 = vpop.f32.mrf.mxu1 }
 0x34a   : > { %v1039_v13 = vadd.f32 %v1035_v4, %v1009_v52 }
 0x34b   : > { %v1029_v11 = vmul.f32 %v1025_v6, %v983_v2  ;;  %v1030_v14 = vmul.f32 %v1026_v9, %v996_v3 }
 0x34c   : > { %v1043_v15 = vmul.f32 0.7978846, %v1039_v13 }
 0x34d   : > { %v1033_v16 = vmul.f32 0.044715, %v1029_v11  ;;  %v1034_v17 = vmul.f32 0.044715, %v1030_v14 }
 0x34e   : > { %1931 = vtanh.f32 %v1043_v15  ;;  %v984_v19 = vpop.f32.mrf.mxu2  ;;  %v997_v20 = vpop.f32.mrf.mxu3 }
 0x34f   : > { %v1037_v21 = vadd.f32 %v1033_v16, %v983_v2  ;;  %v1038_v22 = vadd.f32 %v1034_v17, %v996_v3 }
 0x351   : > { %v1041_v7 = vmul.f32 0.7978846, %v1037_v21  ;;  %v1042_v23 = vmul.f32 0.7978846, %v1038_v22 }
 0x353   : > { %1933 = vtanh.f32 %v1041_v7 }
 0x354   : > { %v1932_v25 = vpop.eup %1931  ;;  %1935 = vtanh.f32 %v1042_v23 }
 0x355   : > { %v1051_v57 = vadd.f32 1.0, %v1932_v25 }
 0x356   : > { %v1021_v26 = vpop.f32.mrf.mxu2 }
 0x357   : > { %v1022_v58 = vadd.f32 %v1021_v26, %v808_v24  ;;  %v1055_v60 = vmul.f32 0.5, %v1051_v57 }
 0x359   : > { %v1934_v27 = vpop.eup %1933  ;;  %v1028_v28 = vmul.f32 %v1022_v58, %v1022_v58  ;;  %v1059_v29 = vmul.f32 %v1055_v60, %v1009_v52 }
 0x35a   : > { %v1936_v1 = vpop.eup %1935  ;;  %v1049_v30 = vadd.f32 1.0, %v1934_v27 }
 0x35b   : > { %v1032_v5 = vmul.f32 %v1028_v28, %v1022_v58  ;;  %v1063_v31 = vpack.c.bf16 %v1059_v29, %v1059_v29  ;;  %v1050_v8 = vadd.f32 1.0, %v1936_v1 }
 0x35c   : > { %v1053_v33 = vmul.f32 0.5, %v1049_v30 }
 0x35d   : > { %v1036_v34 = vmul.f32 0.044715, %v1032_v5  ;;  %1359 = vmatmul.bf16.vlgmr.msra.gmra.mxu1 %v1063_v31  ;;  %v1054_v35 = vmul.f32 0.5, %v1050_v8 }
 0x35e   : > { %v1023_v36 = vpop.f32.mrf.mxu2  ;;  %v1057_v37 = vmul.f32 %v1053_v33, %v983_v2 }
 0x35f   : > { %v1040_v38 = vadd.f32 %v1036_v34, %v1022_v58  ;;  %v1058_v39 = vmul.f32 %v1054_v35, %v996_v3 }
 0x360   : > { %v1061_v40 = vpack.c.bf16 %v1057_v37, %v1057_v37 }
 0x361   : > { %v1044_v41 = vmul.f32 0.7978846, %v1040_v38  ;;  %v1062_v42 = vpack.c.bf16 %v1058_v39, %v1058_v39 }
 0x362   : > { %1333 = vmatmul.bf16.vlgmr.msrb.gmra.mxu3 %v1061_v40 }
 0x363   : > { %1937 = vtanh.f32 %v1044_v41  ;;  %1346 = vmatmul.bf16.vlgmr.msrb.gmra.mxu0 %v1062_v42 }
 0x369   : > { %v1938_v0 = vpop.eup %1937 }
 0x36a   : > { %v1052_v43 = vadd.f32 1.0, %v1938_v0 }
 0x36c   : > { %v1056_v44 = vmul.f32 0.5, %v1052_v43 }
 0x36e   : > { %v1060_v45 = vmul.f32 %v1056_v44, %v1022_v58 }
 0x370   : > { %v1064_v46 = vpack.c.bf16 %v1060_v45, %v1060_v45 }
 0x372   : > { %1372 = vmatmul.bf16.vlgmr.msra.gmra.mxu2 %v1064_v46 }
 0x3da   : > { %v1360_v47 = vpop.f32.mrf.mxu1 }
 0x3e0   : > { %v1347_v48 = vpop.f32.mrf.mxu0 }
 0x3e2   : > { %v1362_v49 = vpop.f32.mrf.mxu1 }
 0x3e5   : > { %v1334_v50 = vpop.f32.mrf.mxu3 }
 0x3e6   : > { %v1335_v53 = vadd.f32 %v1908_v51, %v1334_v50 }
 0x3e8   : > { %v1349_v52 = vpop.f32.mrf.mxu0  ;;  %v1348_v55 = vadd.f32 %v1347_v48, %v1335_v53 }
 0x3ea   : > { %v1361_v56 = vadd.f32 %v1360_v47, %v1348_v55 }
 0x3ed   : > { %v1336_v54 = vpop.f32.mrf.mxu3 }
 0x3f5   : > { %v1373_v59 = vpop.f32.mrf.mxu2 }
 0x3f6   : > { %v1374_v61 = vadd.f32 %v1373_v59, %v1361_v56 }
 0x3f8   : > { %v1377_v62 = vadd.f32 %v1374_v61, %v2335_v32 }
 0x3fa   : > { %1378 = vst [vmem:[%s465_s22] sm:$0xff] %v1377_v62 }
 0x3fb   : > { %2026 = shalt.err (!%p2023_p8)
}
 0x3fc   : > { %1843 = dma.vmem_to_hbm [thread:$0]  (%p2187_p5), %s1393_s27, 128, %s1395_s9, %s1380_s14  }
 0x3fd   : > { %v1375_v32 = vpop.f32.mrf.mxu2 }
 0x3fe PF: > { %p1860_p9 = scmp.ge.s32.totalorder %s2069_s28, 2  ;;  %s1406_s16 = sand.u32 1, %s2057_s25  }
 0x3ff   : > { %s1407_s21 = scalar_lea.sflag [#allocation4], %s1406_s16 }
 0x400   : > { %p1853_p10 = pnand %p1860_p9, %p2191_p6 }
 0x402   : > { %p1854_p11 = pneg %p1853_p10 }
 0x404   : > { %2052 = dma.done.wait (%p1854_p11), %s1407_s21, 128  }
 0x405   : > { %2054 = vsyncadd (%p1854_p11), %s1407_s21, 4294967168  ;;  %s2416_s28 = sld [smem:[#allocation12_spill]]  ;;  %s2419_s25 = smov %s2061_s26 }
 0x406   : > { %s2417_s22 = sld [smem:[#allocation11_spill]] }
 0x407   : > { %s2418_s27 = sld [smem:[#allocation13_spill]] }
 0x40b   : > { %p25_p12 = scmp.ge.s32.totalorder %s2416_s28, 4  }
 0x40c   : > { %s2420_s26 = smov %s2417_s22 }
 0x40d   :  { %27 = sbr.rel (!%p25_p12) target bundleno = 7 (0x7), region = 116 }
 0x412   :  { %1413 = vsyncpa [#allocation3], 1 }
 0x413   :  { %1415 = vsyncpa [#allocation3 + $0x1], 1 }
 0x414   :  { %1416 = vsyncpa [#allocation6], 1 }
 0x415   :  { %1417 = vsyncpa [#allocation4], 1 }
 0x416   :  { %1419 = vsyncpa [#allocation4 + $0x1], 1 }

// kernel: tpu_custom_call.1
= control target key start
LH: loop header
LB: loop body
LE: loop exit
PB: predicated region body
PF: predicated region fallthrough
CT: control target
= control target key end

     0   :  { %s2388_s0 = inlined_call_operand.vmem [shape: f32[2,8,128], index: 0, kind: input, shape index: {}]   ;;  %s2389_s1 = inlined_call_operand.vmem [shape: f32[1,128], index: 1, kind: input, shape index: {}]   ;;  %s2390_s2 = inlined_call_operand.vmem [shape: f32[1,128], index: 2, kind: input, shape index: {}]   ;;  %s2391_s3 = inlined_call_operand.vmem [shape: bf16[64,8], index: 3, kind: input, shape index: {}]   ;;  %s2392_s4 = inlined_call_operand.vmem [shape: f32[64,1], index: 4, kind: input, shape index: {}]   ;;  %s2393_s5 = inlined_call_operand.vmem [shape: bf16[8,64], index: 5, kind: input, shape index: {}]   ;;  %s2394_s6 = inlined_call_operand.vmem [shape: f32[8,1], index: 6, kind: input, shape index: {}]   ;;  %s2395_s7 = inlined_call_operand.vmem [shape: f32[1,128], index: 7, kind: input, shape index: {}]   ;;  %s2396_s8 = inlined_call_operand.vmem [shape: f32[1,128], index: 8, kind: input, shape index: {}]   ;;  %s2397_s9 = inlined_call_operand.hbm [shape: bf16[128,512], index: 9, kind: input, shape index: {}]   ;;  %s2398_s10 = inlined_call_operand.vmem [shape: f32[1,512], index: 10, kind: input, shape index: {}]   ;;  %s2399_s11 = inlined_call_operand.hbm [shape: bf16[512,128], index: 11, kind: input, shape index: {}]   ;;  %s2400_s12 = inlined_call_operand.vmem [shape: f32[1,128], index: 12, kind: input, shape index: {}]   ;;  %s2401_s13 = inlined_call_operand.hbm [shape: f32[2,8,128], index: 13, kind: output, shape index: {}]  }
   0x1   :  { %2406 = sst [smem:[#allocation15_spill]] %s2397_s9 }
   0x2   :  { %18 = vsyncpa [#allocation3], 0 }
   0x3   :  { %19 = vsyncpa [#allocation6], 0 }
   0x4   :  { %20 = vsyncpa [#allocation4], 0 }
   0x5   :  { %22 = vsyncpa [#allocation4 + $0x1], 0  ;;  %s2149_s25 = smov 0   ;;  %s2151_s26 = smov 0  }
   0x6   :  { %s2153_s27 = smov 0   ;;  %s2155_s28 = smov 0  }
   0x7 LB: > { %2407 = sst [smem:[#allocation11_spill]] %s2065_s27  ;;  %s2170_s29 = sadd.s32 4294967295, %s2069_s28   ;;  %s2069_s28 = sphi %s2155_s28, %s2416_s28   ;;  %s2065_s27 = sphi %s2153_s27, %s2418_s27   ;;  %s2061_s26 = sphi %s2151_s26, %s2420_s26   ;;  %s2057_s25 = sphi %s2149_s25, %s2419_s25  }
   0x8   : > { %s1476_s30 = sadd.s32 4294967294, %s2069_s28   ;;  %s2174_s14 = sadd.s32 1, %s2069_s28  }
   0x9   : > { %2408 = sst [smem:[#allocation12_spill]] %s2174_s14  ;;  %s313_s15 = sadd.s32 1, %s2065_s27 }
   0xa   : > { %s310_s16 = ssub.s32 %s2069_s28, %s2174_s14  ;;  %p323_p0 = scmp.ne.s32.totalorder %s2065_s27, %s2061_s26 }
   0xb   : > { %p311_p1 = scmp.eq.s32.totalorder %s310_s16, 0  ;;  %p324_p2 = scmp.eq.s32.totalorder %s2170_s29, 1 }
   0xc   : > { %p329_p3 = scmp.ne.s32.totalorder %s2061_s26, %s2057_s25  ;;  %p330_p4 = scmp.eq.s32.totalorder %s1476_s30, 1 }
   0xd   : > { %s2185_s17 = scalar_select %p311_p1, %s2065_s27, %s313_s15  }
   0xe   : > { %p2187_p5 = por %p324_p2, %p323_p0  ;;  %p2191_p6 = por %p330_p4, %p329_p3 }
   0xf   : > { %2409 = sst [smem:[#allocation13_spill]] %s2185_s17  ;;  %p1477_p7 = scmp.ge.s32.totalorder %s2069_s28, 1 }
  0x10   : > { %s2411_s19 = scalar_select %p2191_p6, 1, 0 }
  0x11   : > { %p337_p8 = scmp.lt.s32.totalorder %s2069_s28, 3  ;;  %p1856_p9 = scmp.eq.s32.totalorder %s2170_s29, 0 }
  0x12   : > { %2412 = sst [smem:[#allocation14_spill]] %s2411_s19  ;;  %s2071_s24 = smov [#allocation2]  }
  0x13   : > { %p2198_p10 = pnand %p1477_p7, %p337_p8  ;;  %s2414_s9 = sld [smem:[#allocation15_spill]] }
  0x14   : > { %s374_s30 = sshll.u32 %s2071_s24, 4  ;;  %s389_s17 = sshll.u32 %s2399_s11, 4  ;;  %s375_s30 = int_to_ptr.vmem [resolvable:$true] %s374_s30  ;;  %s390_s17 = int_to_ptr.hbm [resolvable:$true] %s389_s17 }
  0x15   : > { %p1845_p11 = pneg %p2198_p10  ;;  %s2072_s27 = smov 256  }
  0x16   : > { %s2073_s14 = smov 16   ;;  %s2074_s19 = smov [#allocation5]  }
  0x17   : > { %p1846_p12 = pnand %p1856_p9, %p1845_p11  ;;  %s391_s21 = sshll.u32 %s2074_s19, 4  ;;  %s392_s21 = int_to_ptr.vmem [resolvable:$true] %s391_s21 }
  0x18   : > { %s2075_s22 = smov 64   ;;  %417 = sbr.rel (%p2198_p10) target bundleno = 1022 (0x3fe), region = 72 }
  0x19   : > { %s372_s23 = sshll.u32 %s2414_s9, 4  ;;  %s2076_s9 = smov 4   ;;  %s373_s23 = int_to_ptr.hbm [resolvable:$true] %s372_s23 }
  0x1a   : > { %1848 = dma.hbm_to_vmem [thread:$0]  (!%p1846_p12), %s373_s23, 4096, %s375_s30, [#allocation3], %s2072_s27, %s2072_s27, %s2073_s14  }
  0x1b   : > { %1851 = dma.hbm_to_vmem [thread:$0]  (!%p1846_p12), %s390_s17, 4096, %s392_s21, [#allocation6], %s2075_s22, %s2075_s22, %s2076_s9  }
  0x1d   : > { %2044 = dma.done.wait (%p1856_p9), [#allocation3], 4096  }
  0x1e   : > { %2046 = vsyncadd (%p1856_p9), [#allocation3], 4294963200 }
  0x1f   : > { %2048 = dma.done.wait (%p1856_p9), [#allocation6], 4096  }
  0x20   : > { %2050 = vsyncadd (%p1856_p9), [#allocation6], 4294963200  ;;  %p466_p13 = scmp.lt.s32.totalorder %s2170_s29, 1  ;;  %v2077_v2 = vmov 128.0   ;;  %v527_v8 = vld [vmem:[%s2392_s4 + $0x30] sm:$0xff]  ;;  %v2078_v9 = vmov 0  }
  0x21   : > { %1909 = vrcp.f32 %v2077_v2  ;;  %1901 = vset.pattern.permute.xlu1 %v2078_v9  ;;  %1902 = vset.pattern.permute.xlu2 %v2078_v9  ;;  %v528_v19 = vld [vmem:[%s2392_s4 + $0x38] sm:$0xff]  ;;  %v525_v26 = vld [vmem:[%s2392_s4 + $0x20] sm:$0xff]  ;;  %v522_v27 = vld [vmem:[%s2392_s4 + $0x8] sm:$0xff]  ;;  %vm602_vm4 = vcmask 1043456   ;;  %vm589_vm5 = vcmask 64512   ;;  %vm712_vm6 = vcmask 523264  }
  0x22   : > { %s467_s27 = scalar_select %p466_p13, %s2170_s29, 1  ;;  %561 = vperm.xlu1 %1901, %v527_v8   ;;  %1903 = vset.pattern.permute.xlu0 %v2078_v9  ;;  %v524_v20 = vld [vmem:[%s2392_s4 + $0x18] sm:$0xff]  ;;  %v523_v29 = vld [vmem:[%s2392_s4 + $0x10] sm:$0xff]  ;;  %v1904_v31 = vld [vmem:[%s2389_s1] ss:$0 sm:$0xff] }
  0x23   : > { %551 = vperm.xlu2 %1902, %v525_v26   ;;  %v1905_v34 = vld [vmem:[%s2390_s2] ss:$0 sm:$0xff]  ;;  %v526_v36 = vld [vmem:[%s2392_s4 + $0x28] sm:$0xff]  ;;  %v1769_v44 = vld [vmem:[%s2391_s3 + $0x10] sm:$0xff]  ;;  %s463_s23 = sand.u32 1, %s2061_s26   ;;  %s1764_s30 = sshll.u32 %s2170_s29, 3 }
  0x24   : > { %s1485_s9 = sshll.u32 %s467_s27, 3  ;;  %v1767_v40 = vld [vmem:[%s2391_s3] sm:$0xff]  ;;  %v1768_v42 = vld [vmem:[%s2391_s3 + $0x8] sm:$0xff]  ;;  %v1770_v45 = vld [vmem:[%s2391_s3 + $0x18] sm:$0xff]  ;;  %s1484_s24 = sshll.u32 %s463_s23, 3 }
  0x25   : > { %s469_s19 = scalar_lea.vmem %s2388_s0, %s1485_s9  ;;  %v521_v41 = vld [vmem:[%s2392_s4] sm:$0xff]  ;;  %s1390_s21 = scalar_lea.hbm %s2401_s13, %s1764_s30 }
  0x26   : > { %v2227_v0 = vld [vmem:[%s469_s19] sm:$0xff]  ;;  %s465_s22 = scalar_lea.vmem [#allocation7], %s1484_s24  ;;  %s1394_s9 = sshll.u32 %s1390_s21, 4  ;;  %s1395_s9 = int_to_ptr.hbm [resolvable:$true] %s1394_s9 }
  0x27   : > { %474 = vadd.xlane.f32.xlu0 %v2227_v0  ;;  %v484_v1 = vmul.f32 %v2227_v0, %v2227_v0  ;;  %v1910_v3 = vpop.eup %1909  ;;  %v730_v43 = vld [vmem:[%s2394_s6] sm:$0xff]  ;;  %s1392_s27 = sshll.u32 %s465_s22, 4  ;;  %s1380_s14 = scalar_lea.sflag [#allocation4], %s463_s23  ;;  %s1393_s27 = int_to_ptr.vmem [resolvable:$true] %s1392_s27 }
  0x28   : > { %v477_v4 = vmul.f32 128.0, %v1910_v3  ;;  %vm481_vm0 = vweird.f32 %v1910_v3  ;;  %s2013_s17 = sshra.s32 %s1395_s9, 4  ;;  %s2019_s24 = scalar_lea.hbm %s2401_s13, 16  ;;  %s2014_s17 = int_to_ptr.hbm [resolvable:$true] %s2013_s17 }
  0x29   : > { %s2015_s29 = scalar_lea.hbm %s2014_s17, 8  ;;  %p2020_p3 = scmp.lt.s32.totalorder %s2014_s17, %s2401_s13 }
  0x2a   : > { %v478_v5 = vsub.f32 1.0, %v477_v4  ;;  %566 = vperm.xlu1 %1901, %v528_v19   ;;  %p2016_p0 = scmp.ne.s32.totalorder %s2014_s17, %s2015_s29  ;;  %p2021_p4 = scmp.lt.s32.totalorder %s2019_s24, %s2015_s29 }
  0x2b   : > { %556 = vperm.xlu2 %1902, %v526_v36  }
  0x2c   : > { %v479_v6 = vmul.f32 %v1910_v3, %v478_v5  ;;  %p2017_p1 = pnand %p2016_p0, %p2187_p5  ;;  %p2022_p7 = por %p2021_p4, %p2020_p3 }
  0x2e   : > { %v480_v7 = vadd.f32 %v1910_v3, %v479_v6  ;;  %p2018_p2 = pneg %p2017_p1 }
  0x2f   : > { %485 = vadd.xlane.f32.xlu0 %v484_v1 }
  0x30   : > { %v2235_v11 = vsel %vm481_vm0, %v1910_v3, %v480_v7  ;;  %p2023_p8 = pnand %p2022_p7, %p2018_p2 }
  0x32   : > { %546 = vperm.xlu1 %1901, %v524_v20  }
  0x33   : > { %531 = vperm.xlu2 %1902, %v521_v41  }
  0x3a   : > { %536 = vperm.xlu1 %1901, %v522_v27  }
  0x3b   : > { %733 = vperm.xlu2 %1902, %v730_v43  }
  0x43   : > { %541 = vperm.xlu0 %1903, %v523_v29  }
  0x7d   : > { %v552_v52 = vpop.permute.xlu2 %551 }
  0x85   : > { %v557_v55 = vpop.permute.xlu2 %556 }
  0x8d   : > { %v532_v63 = vpop.permute.xlu2 %531 }
  0x94   : > { %v562_v48 = vpop.permute.xlu1 %561 }
  0x9a   : > { %v475_v10 = vpop.xlane.xlu0 %474 }
  0x9b   : > { %v483_v12 = vmul.f32 %v2235_v11, %v475_v10 }
  0x9c   : > { %v567_v51 = vpop.permute.xlu1 %566 }
  0x9d   : > { %v488_v14 = vmul.f32 %v483_v12, %v483_v12  ;;  %v491_v30 = vsub.f32 %v2227_v0, %v483_v12 }
  0xa2   : > { %v486_v13 = vpop.xlane.xlu0 %485 }
  0xa3   : > { %v487_v15 = vmul.f32 %v486_v13, %v2235_v11 }
  0xa4   : > { %v547_v54 = vpop.permute.xlu1 %546 }
  0xa5   : > { %v489_v16 = vsub.f32 %v487_v15, %v488_v14 }
  0xa7   : > { %v490_v17 = vmax.f32 %v489_v16, 0.0 }
  0xa9   : > { %v492_v18 = vadd.f32 1e-06, %v490_v17 }
  0xab   : > { %1911 = vrsqrt.f32 %v492_v18  ;;  %vm499_vm2 = vweird.f32 %v492_v18 }
  0xac   : > { %v537_v62 = vpop.permute.xlu1 %536 }
  0xb1   : > { %v1912_v21 = vpop.eup %1911 }
  0xb2   : > { %v494_v22 = vmul.f32 %v1912_v21, %v492_v18  ;;  %vm500_vm1 = vweird.f32 %v1912_v21 }
  0xb3   : > { %vm501_vm3 = vmor %vm499_vm2, %vm500_vm1 }
  0xb4   : > { %v495_v23 = vmul.f32 %v1912_v21, %v494_v22 }
  0xb5   : > { %v542_v59 = vpop.permute.xlu0 %541 }
  0xb6   : > { %v496_v24 = vmul.f32 0.5, %v495_v23 }
  0xb8   : > { %v497_v25 = vsub.f32 1.5, %v496_v24 }
  0xba   : > { %v498_v28 = vmul.f32 %v1912_v21, %v497_v25 }
  0xbc   : > { %v502_v32 = vsel %vm501_vm3, %v1912_v21, %v498_v28 }
  0xbd   : > { %v503_v33 = vmul.f32 %v502_v32, %v491_v30 }
  0xbf   : > { %v507_v35 = vmul.f32 %v1904_v31, %v503_v33 }
  0xc1   : > { %v511_v37 = vadd.f32 %v1905_v34, %v507_v35 }
  0xc3   : > { %v520_v38 = vpack.c.bf16 %v511_v37, %v511_v37 }
  0xc5   : > { %v604_v39 = vsel %vm602_vm4, %v520_v38, 0 }
  0xc6   : > { %613 = vmatpush.bf16.msra.mxu0 %v604_v39 }
  0xc9   : > { %1502 = vmatmul.msk.bf16.vlgmr.msra.gmra.mxu0 %vm589_vm5, %v1767_v40 }
  0xd9   : > { %1503 = vmatmul.msk.bf16.gmra.mxu0 %vm589_vm5, %v1768_v42 }
  0xe9   : > { %1504 = vmatmul.msk.bf16.gmra.mxu0 %vm589_vm5, %v1769_v44 }
  0xf9   : > { %1505 = vmatmul.msk.bf16.gmra.mxu0 %vm589_vm5, %v1770_v45 }
 0x146   : > { %v615_v46 = vpop.f32.mrf.mxu0 }
 0x147   : > { %v2301_v8 = vadd.f32 %v615_v46, %v532_v63 }
 0x149   : > { %v635_v17 = vmul.f32 %v2301_v8, %v2301_v8 }
 0x14b   : > { %v643_v27 = vmul.f32 %v635_v17, %v2301_v8 }
 0x14d   : > { %v651_v36 = vmul.f32 0.044715, %v643_v27  ;;  %v1801_v27 = vld [vmem:[#allocation2 + $0xec] sm:$0xf0] }
 0x14e   : > { %v617_v47 = vpop.f32.mrf.mxu0 }
 0x14f   : > { %v2296_v5 = vadd.f32 %v617_v47, %v537_v62  ;;  %v659_v43 = vadd.f32 %v651_v36, %v2301_v8  ;;  %v1793_v36 = vld [vmem:[#allocation2 + $0xac] sm:$0xf0] }
 0x151   : > { %v636_v14 = vmul.f32 %v2296_v5, %v2296_v5 }
 0x153   : > { %v644_v23 = vmul.f32 %v636_v14, %v2296_v5 }
 0x155   : > { %v652_v33 = vmul.f32 0.044715, %v644_v23 }
 0x156   : > { %v620_v49 = vpop.f32.mrf.mxu0 }
 0x157   : > { %v2290_v1 = vadd.f32 %v620_v49, %v542_v59  ;;  %v660_v41 = vadd.f32 %v652_v33, %v2296_v5  ;;  %v667_v49 = vmul.f32 0.7978846, %v659_v43 }
 0x159   : > { %v637_v9 = vmul.f32 %v2290_v1, %v2290_v1  ;;  %v668_v47 = vmul.f32 0.7978846, %v660_v41  ;;  %v1799_v41 = vld [vmem:[#allocation2 + $0xe4] sm:$0xf] }
 0x15b   : > { %v645_v18 = vmul.f32 %v637_v9, %v2290_v1 }
 0x15d   : > { %v653_v28 = vmul.f32 0.044715, %v645_v18 }
 0x15e   : > { %v622_v50 = vpop.f32.mrf.mxu0 }
 0x15f   : > { %v2286_v60 = vadd.f32 %v622_v50, %v547_v54  ;;  %v661_v37 = vadd.f32 %v653_v28, %v2290_v1  ;;  %v1605_v28 = vld [vmem:[#allocation2 + $0xc0] sm:$0xf] }
 0x161   : > { %v638_v3 = vmul.f32 %v2286_v60, %v2286_v60  ;;  %v669_v45 = vmul.f32 0.7978846, %v661_v37 }
 0x163   : > { %v646_v13 = vmul.f32 %v638_v3, %v2286_v60 }
 0x165   : > { %v654_v21 = vmul.f32 0.044715, %v646_v13 }
 0x166   : > { %v625_v53 = vpop.f32.mrf.mxu0 }
 0x167   : > { %v2284_v58 = vadd.f32 %v625_v53, %v552_v52  ;;  %v662_v32 = vadd.f32 %v654_v21, %v2286_v60 }
 0x169   : > { %v639_v2 = vmul.f32 %v2284_v58, %v2284_v58  ;;  %v670_v40 = vmul.f32 0.7978846, %v662_v32 }
 0x16b   : > { %v647_v10 = vmul.f32 %v639_v2, %v2284_v58 }
 0x16d   : > { %v655_v19 = vmul.f32 0.044715, %v647_v10 }
 0x16e   : > { %v627_v56 = vpop.f32.mrf.mxu0 }
 0x16f   : > { %v2282_v57 = vadd.f32 %v627_v56, %v557_v55  ;;  %v663_v29 = vadd.f32 %v655_v19, %v2284_v58 }
 0x171   : > { %v640_v61 = vmul.f32 %v2282_v57, %v2282_v57  ;;  %v671_v39 = vmul.f32 0.7978846, %v663_v29 }
 0x173   : > { %v648_v6 = vmul.f32 %v640_v61, %v2282_v57 }
 0x175   : > { %v656_v15 = vmul.f32 0.044715, %v648_v6 }
 0x176   : > { %v630_v4 = vpop.f32.mrf.mxu0 }
 0x177   : > { %v2299_v7 = vadd.f32 %v630_v4, %v562_v48  ;;  %v664_v24 = vadd.f32 %v656_v15, %v2282_v57 }
 0x179   : > { %v641_v12 = vmul.f32 %v2299_v7, %v2299_v7  ;;  %v672_v35 = vmul.f32 0.7978846, %v664_v24 }
 0x17b   : > { %v649_v16 = vmul.f32 %v641_v12, %v2299_v7 }
 0x17d   : > { %v657_v20 = vmul.f32 0.044715, %v649_v16 }
 0x17e   : > { %v632_v22 = vpop.f32.mrf.mxu0 }
 0x17f   : > { %v633_v25 = vadd.f32 %v632_v22, %v567_v51  ;;  %v665_v26 = vadd.f32 %v657_v20, %v2299_v7 }
 0x181   : > { %v642_v30 = vmul.f32 %v633_v25, %v633_v25  ;;  %v673_v31 = vmul.f32 0.7978846, %v665_v26 }
 0x183   : > { %v650_v34 = vmul.f32 %v642_v30, %v633_v25  ;;  %1913 = vtanh.f32 %v673_v31 }
 0x184   : > { %1915 = vtanh.f32 %v672_v35  ;;  %v1589_v35 = vld [vmem:[#allocation2 + $0xa0] sm:$0xf] }
 0x185   : > { %v658_v38 = vmul.f32 0.044715, %v650_v34  ;;  %1917 = vtanh.f32 %v671_v39  ;;  %v1590_v37 = vor.u32 %v1793_v36, %v1589_v35  ;;  %v1789_v39 = vld [vmem:[#allocation2 + $0x8c] sm:$0xf0]  ;;  %v1533_v35 = vld [vmem:[#allocation2 + $0x28] sm:$0xf] }
 0x186   : > { %1919 = vtanh.f32 %v670_v40 }
 0x187   : > { %v666_v42 = vadd.f32 %v658_v38, %v633_v25  ;;  %v1573_v38 = vld [vmem:[#allocation2 + $0x80] sm:$0xf] }
 0x188   : > { %v1574_v40 = vor.u32 %v1789_v39, %v1573_v38  ;;  %v1792_v38 = vld [vmem:[#allocation2 + $0xac] sm:$0xf]  ;;  %v1599_v39 = vld [vmem:[#allocation2 + $0xb8] sm:$0xf0] }
 0x189   : > { %v674_v44 = vmul.f32 0.7978846, %v666_v42  ;;  %v1914_v46 = vpop.eup %1913  ;;  %v1623_v42 = vld [vmem:[#allocation2 + $0xf0] sm:$0xf0] }
 0x18a   : > { %v1916_v48 = vpop.eup %1915  ;;  %v689_v50 = vadd.f32 1.0, %v1914_v46  ;;  %v1626_v43 = vor.u32 %v1799_v41, %v1623_v42  ;;  %v1557_v46 = vld [vmem:[#allocation2 + $0x60] sm:$0xf]  ;;  %v1602_v41 = vor.u32 %v1792_v38, %v1599_v39  ;;  %v1771_v42 = vld [vmem:[#allocation2 + $0x4] sm:$0xf]  ;;  %v1834_v38 = vld [vmem:[#allocation5 + $0xf8] sm:$0xff] }
 0x18b   : > { %1921 = vtanh.f32 %v674_v44  ;;  %v1918_v51 = vpop.eup %1917  ;;  %v688_v53 = vadd.f32 1.0, %v1916_v48  ;;  %v1802_v44 = vld [vmem:[#allocation2 + $0xf4] sm:$0xf0]  ;;  %v1820_v39 = vld [vmem:[#allocation5 + $0x88] sm:$0xff] }
 0x18c   : > { %1923 = vtanh.f32 %v669_v45  ;;  %v1920_v52 = vpop.eup %1919  ;;  %v697_v56 = vmul.f32 0.5, %v689_v50  ;;  %v687_v59 = vadd.f32 1.0, %v1918_v51  ;;  %986 = vmatpush.bf16.msra.mxu3 %v1626_v43  ;;  %v1607_v50 = vld [vmem:[#allocation2 + $0xd0] sm:$0xf0]  ;;  %v1613_v51 = vld [vmem:[#allocation2 + $0xc8] sm:$0xf] }
 0x18d   : > { %1925 = vtanh.f32 %v668_v47  ;;  %v696_v63 = vmul.f32 0.5, %v688_v53  ;;  %v686_v2 = vadd.f32 1.0, %v1920_v52  ;;  %v1785_v47 = vld [vmem:[#allocation2 + $0x6c] sm:$0xf0]  ;;  %v1798_v53 = vld [vmem:[#allocation2 + $0xd4] sm:$0xf0] }
 0x18e   : > { %1927 = vtanh.f32 %v667_v49  ;;  %v705_v4 = vmul.f32 %v697_v56, %v2299_v7  ;;  %v695_v9 = vmul.f32 0.5, %v687_v59  ;;  %v1558_v48 = vor.u32 %v1785_v47, %v1557_v46  ;;  %v1795_v49 = vld [vmem:[#allocation2 + $0xc4] sm:$0xf]  ;;  %v1781_v56 = vld [vmem:[#allocation2 + $0x4c] sm:$0xf0] }
 0x18f   : > { %v704_v14 = vmul.f32 %v696_v63, %v2282_v57  ;;  %v694_v15 = vmul.f32 0.5, %v686_v2  ;;  %v1610_v52 = vor.u32 %v1795_v49, %v1607_v50  ;;  %v1597_v63 = vld [vmem:[#allocation2 + $0xa8] sm:$0xf]  ;;  %v1788_v46 = vld [vmem:[#allocation2 + $0x8c] sm:$0xf] }
 0x190   : > { %v703_v17 = vmul.f32 %v695_v9, %v2284_v58  ;;  %v707_v58 = vld [vmem:[%s2393_s5] sm:$0xf]  ;;  %v1777_v9 = vld [vmem:[#allocation2 + $0x2c] sm:$0xf0]  ;;  %v1517_v43 = vld [vmem:[#allocation2 + $0x8] sm:$0xf] }
 0x191   : > { %v1922_v54 = vpop.eup %1921  ;;  %v702_v21 = vmul.f32 %v694_v15, %v2286_v60  ;;  %v1621_v60 = vld [vmem:[#allocation2 + $0xe0] sm:$0xf]  ;;  %987 = vmatpush.bf16.msra.mxu3 %v1610_v52  ;;  %v1583_v47 = vld [vmem:[#allocation2 + $0x98] sm:$0xf0] }
 0x192   : > { %v690_v55 = vadd.f32 1.0, %v1922_v54  ;;  %v1924_v61 = vpop.eup %1923  ;;  %v710_v20 = vpack.c.bf16 %v704_v14, %v703_v17  ;;  %v1622_v29 = vor.u32 %v1801_v27, %v1621_v60  ;;  %v1614_v54 = vor.u32 %v1798_v53, %v1613_v51  ;;  %v1581_v14 = vld [vmem:[#allocation2 + $0x88] sm:$0xf]  ;;  %v1779_v60 = vld [vmem:[#allocation2 + $0x44] sm:$0xf] }
 0x193   : > { %v1926_v3 = vpop.eup %1925  ;;  %v685_v10 = vadd.f32 1.0, %v1924_v61  ;;  %v1791_v61 = vld [vmem:[#allocation2 + $0xa4] sm:$0xf]  ;;  %v1543_v27 = vld [vmem:[#allocation2 + $0x50] sm:$0xf0]  ;;  %v1586_v49 = vor.u32 %v1788_v46, %v1583_v47 }
 0x194   : > { %v698_v62 = vmul.f32 0.5, %v690_v55  ;;  %v1928_v12 = vpop.eup %1927  ;;  %v684_v16 = vadd.f32 1.0, %v1926_v3  ;;  %973 = vmatpush.bf16.msra.mxu2 %v1622_v29  ;;  %v1541_v55 = vld [vmem:[#allocation2 + $0x40] sm:$0xf]  ;;  %v1794_v3 = vld [vmem:[#allocation2 + $0xb4] sm:$0xf0]  ;;  %v1546_v29 = vor.u32 %v1779_v60, %v1543_v27 }
 0x195   : > { %v693_v18 = vmul.f32 0.5, %v685_v10  ;;  %v683_v19 = vadd.f32 1.0, %v1928_v12  ;;  %v1542_v59 = vor.u32 %v1781_v56, %v1541_v55  ;;  %v1787_v12 = vld [vmem:[#allocation2 + $0x84] sm:$0xf]  ;;  %v1784_v55 = vld [vmem:[#allocation2 + $0x6c] sm:$0xf] }
 0x196   : > { %v706_v6 = vmul.f32 %v698_v62, %v633_v25  ;;  %v692_v22 = vmul.f32 0.5, %v684_v16  ;;  %v1591_v62 = vld [vmem:[#allocation2 + $0xb0] sm:$0xf0]  ;;  %v1790_v16 = vld [vmem:[#allocation2 + $0x94] sm:$0xf0] }
 0x197   : > { %v701_v7 = vmul.f32 %v693_v18, %v2290_v1  ;;  %v691_v23 = vmul.f32 0.5, %v683_v19  ;;  %v1797_v1 = vld [vmem:[#allocation2 + $0xcc] sm:$0xf0]  ;;  %v1594_v2 = vor.u32 %v1791_v61, %v1591_v62  ;;  %v1582_v17 = vor.u32 %v1790_v16, %v1581_v14  ;;  %v1509_v18 = vld [vmem:[#allocation2] sm:$0xf] }
 0x198   : > { %v711_v13 = vpack.c.bf16 %v706_v6, %v705_v4  ;;  %v700_v25 = vmul.f32 %v692_v22, %v2296_v5  ;;  %v1606_v30 = vor.u32 %v1797_v1, %v1605_v28  ;;  %v1598_v4 = vor.u32 %v1794_v3, %v1597_v63  ;;  %v1525_v6 = vld [vmem:[#allocation2 + $0x20] sm:$0xf]  ;;  %v1773_v19 = vld [vmem:[#allocation2 + $0xc] sm:$0xf0]  ;;  %v1559_v22 = vld [vmem:[#allocation2 + $0x70] sm:$0xf0] }
 0x199   : > { %v709_v24 = vpack.c.bf16 %v702_v21, %v701_v7  ;;  %v699_v57 = vmul.f32 %v691_v23, %v2301_v8  ;;  %v734_v8 = vpop.permute.xlu2 %733  ;;  %988 = vmatpush.bf16.msra.mxu3 %v1594_v2  ;;  %v1526_v10 = vor.u32 %v1777_v9, %v1525_v6  ;;  %v1783_v21 = vld [vmem:[#allocation2 + $0x64] sm:$0xf]  ;;  %v1565_v7 = vld [vmem:[#allocation2 + $0x68] sm:$0xf]  ;;  %v1782_v1 = vld [vmem:[#allocation2 + $0x54] sm:$0xf0] }
 0x19a   : > { %720 = vmatpush.bf16.msra.mxu1 %v711_v13  ;;  %974 = vmatpush.bf16.msra.mxu2 %v1606_v30  ;;  %v1575_v13 = vld [vmem:[#allocation2 + $0x90] sm:$0xf0]  ;;  %v1562_v23 = vor.u32 %v1783_v21, %v1559_v22  ;;  %v1549_v28 = vld [vmem:[#allocation2 + $0x48] sm:$0xf]  ;;  %v1796_v30 = vld [vmem:[#allocation2 + $0xcc] sm:$0xf] }
 0x19b   : > { %v708_v26 = vpack.c.bf16 %v700_v25, %v699_v57  ;;  %v1578_v15 = vor.u32 %v1787_v12, %v1575_v13  ;;  %v1800_v25 = vld [vmem:[#allocation2 + $0xec] sm:$0xf]  ;;  %v1631_v57 = vld [vmem:[#allocation2 + $0xf8] sm:$0xf0]  ;;  %v1825_v27 = vld [vmem:[#allocation5 + $0xb0] sm:$0xff] }
 0x19c   : > { %v1567_v56 = vld [vmem:[#allocation2 + $0x78] sm:$0xf0]  ;;  %v1780_v62 = vld [vmem:[#allocation2 + $0x4c] sm:$0xf]  ;;  %v803_v46 = vld [vmem:[%s2398_s10] sm:$0xf] }
 0x19d   : > { %989 = vmatpush.bf16.msra.mxu3 %v1578_v15  ;;  %v1570_v61 = vor.u32 %v1784_v55, %v1567_v56  ;;  %v1551_v63 = vld [vmem:[#allocation2 + $0x58] sm:$0xf0]  ;;  %v1772_v12 = vld [vmem:[#allocation2 + $0xc] sm:$0xf]  ;;  %v807_v47 = vperm.slane %v803_v46, 2  ;;  %v806_v55 = vperm.slane %v803_v46, 1 }
 0x19e   : > { %721 = vmatpush.bf16.msra.mxu1 %v710_v20  ;;  %975 = vmatpush.bf16.msra.mxu2 %v1590_v37  ;;  %v1510_v20 = vor.u32 %v1773_v19, %v1509_v18  ;;  %v1778_v37 = vld [vmem:[#allocation2 + $0x34] sm:$0xf0]  ;;  %v1554_v3 = vor.u32 %v1780_v62, %v1551_v63  ;;  %v1535_v6 = vld [vmem:[#allocation2 + $0x38] sm:$0xf0] }
 0x19f   : > { %v1519_v13 = vld [vmem:[#allocation2 + $0x18] sm:$0xf0] }
 0x1a0   : > { %v1826_v18 = vld [vmem:[#allocation5 + $0xb8] sm:$0xff] }
 0x1a1   : > { %990 = vmatpush.bf16.msra.mxu3 %v1562_v23  ;;  %v1906_v23 = vld [vmem:[%s2395_s7] ss:$0 sm:$0xff] }
 0x1a2   : > { %722 = vmatpush.bf16.msra.mxu1 %v709_v24  ;;  %976 = vmatpush.bf16.msra.mxu2 %v1574_v40  ;;  %v1786_v24 = vld [vmem:[#allocation2 + $0x74] sm:$0xf0]  ;;  %v1534_v40 = vor.u32 %v1778_v37, %v1533_v35  ;;  %v1821_v35 = vld [vmem:[#allocation5 + $0x90] sm:$0xff] }
 0x1a3   : > { %v1814_v37 = vld [vmem:[#allocation5 + $0x58] sm:$0xff] }
 0x1a5   : > { %991 = vmatpush.bf16.msra.mxu3 %v1546_v29  ;;  %v1824_v29 = vld [vmem:[#allocation5 + $0xa8] sm:$0xff] }
 0x1a6   : > { %723 = vmatpush.bf16.msra.mxu1 %v708_v26  ;;  %977 = vmatpush.bf16.msra.mxu2 %v1558_v48  ;;  %v1566_v26 = vor.u32 %v1786_v24, %v1565_v7 }
 0x1a9   : > { %1506 = vmatmul.msk.bf16.vlgmr.msra.gmra.mxu1 %vm712_vm6, %v707_v58  ;;  %v1634_v58 = vor.u32 %v1800_v25, %v1631_v57  ;;  %v1907_v57 = vld [vmem:[%s2396_s8] ss:$0 sm:$0xff] }
 0x1aa   : > { %978 = vmatpush.bf16.msra.mxu2 %v1542_v59 }
 0x1ae   : > { %979 = vmatpush.bf16.msra.mxu2 %v1526_v10 }
 0x1b2   : > { %980 = vmatpush.bf16.msra.mxu2 %v1510_v20  ;;  %v1817_v20 = vld [vmem:[#allocation5 + $0x70] sm:$0xff] }
 0x1b6   : > { %1012 = vmatpush.bf16.msrb.mxu2 %v1634_v58 }
 0x226   : > { %v725_v5 = vpop.f32.mrf.mxu1 }
 0x227   : > { %v729_v31 = vadd.f32 %v725_v5, %v2227_v0  ;;  %v1629_v0 = vld [vmem:[#allocation2 + $0xe8] sm:$0xf]  ;;  %v1615_v5 = vld [vmem:[#allocation2 + $0xd8] sm:$0xf0] }
 0x228   : > { %v1630_v45 = vor.u32 %v1802_v44, %v1629_v0  ;;  %v1511_v0 = vld [vmem:[#allocation2 + $0x10] sm:$0xf0] }
 0x229   : > { %v2335_v32 = vadd.f32 %v734_v8, %v729_v31  ;;  %v1550_v31 = vor.u32 %v1782_v1, %v1549_v28  ;;  %v1618_v8 = vor.u32 %v1796_v30, %v1615_v5  ;;  %v1514_v44 = vor.u32 %v1771_v42, %v1511_v0  ;;  %v1810_v28 = vld [vmem:[#allocation5 + $0x38] sm:$0xff]  ;;  %v1809_v1 = vld [vmem:[#allocation5 + $0x30] sm:$0xff]  ;;  %v1823_v30 = vld [vmem:[#allocation5 + $0xa0] sm:$0xff] }
 0x22a   : > { %999 = vmatpush.bf16.msrb.mxu1 %v1630_v45  ;;  %v1774_v45 = vld [vmem:[#allocation2 + $0x14] sm:$0xf0]  ;;  %v1816_v5 = vld [vmem:[#allocation5 + $0x68] sm:$0xff]  ;;  %v1833_v42 = vld [vmem:[#allocation5 + $0xf0] sm:$0xff] }
 0x22b   : > { %739 = vadd.xlane.f32.xlu1 %v2335_v32  ;;  %v742_v33 = vmul.f32 %v2335_v32, %v2335_v32  ;;  %1013 = vmatpush.bf16.msrb.mxu2 %v1618_v8  ;;  %v1518_v48 = vor.u32 %v1774_v45, %v1517_v43  ;;  %v1822_v8 = vld [vmem:[#allocation5 + $0x98] sm:$0xff]  ;;  %v1819_v0 = vld [vmem:[#allocation5 + $0x80] sm:$0xff]  ;;  %v1804_v43 = vld [vmem:[#allocation5 + $0x8] sm:$0xff] }
 0x22c   : > { %v1832_v45 = vld [vmem:[#allocation5 + $0xe8] sm:$0xff] }
 0x22d   : > { %743 = vadd.xlane.f32.xlu2 %v742_v33  ;;  %v1775_v33 = vld [vmem:[#allocation2 + $0x24] sm:$0xf] }
 0x22e   : > { %v727_v34 = vpop.f32.mrf.mxu1  ;;  %1000 = vmatpush.bf16.msrb.mxu1 %v1614_v54 }
 0x22f   : > { %v1527_v34 = vld [vmem:[#allocation2 + $0x30] sm:$0xf0]  ;;  %1014 = vmatpush.bf16.msrb.mxu2 %v1602_v41 }
 0x230   : > { %v1530_v36 = vor.u32 %v1775_v33, %v1527_v34  ;;  %v1815_v33 = vld [vmem:[#allocation5 + $0x60] sm:$0xff]  ;;  %v1813_v41 = vld [vmem:[#allocation5 + $0x50] sm:$0xff] }
 0x231   : > { %v1807_v34 = vld [vmem:[#allocation5 + $0x20] sm:$0xff] }
 0x232   : > { %1001 = vmatpush.bf16.msrb.mxu1 %v1598_v4  ;;  %992 = vmatpush.bf16.msra.mxu3 %v1530_v36  ;;  %v1776_v4 = vld [vmem:[#allocation2 + $0x2c] sm:$0xf]  ;;  %v1806_v36 = vld [vmem:[#allocation5 + $0x18] sm:$0xff] }
 0x233   : > { %1015 = vmatpush.bf16.msrb.mxu2 %v1586_v49  ;;  %v1538_v10 = vor.u32 %v1776_v4, %v1535_v6  ;;  %v1811_v49 = vld [vmem:[#allocation5 + $0x40] sm:$0xff] }
 0x236   : > { %1002 = vmatpush.bf16.msrb.mxu1 %v1582_v17  ;;  %993 = vmatpush.bf16.msra.mxu3 %v1514_v44  ;;  %v1818_v17 = vld [vmem:[#allocation5 + $0x78] sm:$0xff]  ;;  %v1812_v44 = vld [vmem:[#allocation5 + $0x48] sm:$0xff] }
 0x237   : > { %1016 = vmatpush.bf16.msrb.mxu2 %v1570_v61  ;;  %1338 = vmatpush.bf16.msrb.mxu0 %v1818_v17 }
 0x23a   : > { %1003 = vmatpush.bf16.msrb.mxu1 %v1566_v26  ;;  %1325 = vmatpush.bf16.msrb.mxu3 %v1810_v28 }
 0x23b   : > { %1017 = vmatpush.bf16.msrb.mxu2 %v1554_v3  ;;  %1339 = vmatpush.bf16.msrb.mxu0 %v1817_v20 }
 0x23e   : > { %1004 = vmatpush.bf16.msrb.mxu1 %v1550_v31  ;;  %1326 = vmatpush.bf16.msrb.mxu3 %v1809_v1  ;;  %v1808_v31 = vld [vmem:[#allocation5 + $0x28] sm:$0xff] }
 0x23f   : > { %1018 = vmatpush.bf16.msrb.mxu2 %v1538_v10  ;;  %1340 = vmatpush.bf16.msrb.mxu0 %v1816_v5 }
 0x242   : > { %1005 = vmatpush.bf16.msrb.mxu1 %v1534_v40  ;;  %1327 = vmatpush.bf16.msrb.mxu3 %v1808_v31  ;;  %v1805_v40 = vld [vmem:[#allocation5 + $0x10] sm:$0xff] }
 0x243   : > { %1341 = vmatpush.bf16.msrb.mxu0 %v1815_v33 }
 0x246   : > { %1006 = vmatpush.bf16.msrb.mxu1 %v1518_v48  ;;  %1328 = vmatpush.bf16.msrb.mxu3 %v1807_v34  ;;  %v1803_v48 = vld [vmem:[#allocation5] sm:$0xff] }
 0x247   : > { %1342 = vmatpush.bf16.msrb.mxu0 %v1814_v37 }
 0x24a   : > { %1351 = vmatpush.bf16.msra.mxu1 %v1826_v18  ;;  %1329 = vmatpush.bf16.msrb.mxu3 %v1806_v36  ;;  %v1827_v18 = vld [vmem:[#allocation5 + $0xc0] sm:$0xff] }
 0x24b   : > { %1343 = vmatpush.bf16.msrb.mxu0 %v1813_v41 }
 0x24e   : > { %1352 = vmatpush.bf16.msra.mxu1 %v1825_v27  ;;  %1330 = vmatpush.bf16.msrb.mxu3 %v1805_v40 }
 0x24f   : > { %1344 = vmatpush.bf16.msrb.mxu0 %v1812_v44 }
 0x252   : > { %1353 = vmatpush.bf16.msra.mxu1 %v1824_v29  ;;  %1331 = vmatpush.bf16.msrb.mxu3 %v1804_v43 }
 0x253   : > { %1345 = vmatpush.bf16.msrb.mxu0 %v1811_v49 }
 0x256   : > { %1354 = vmatpush.bf16.msra.mxu1 %v1823_v30  ;;  %1332 = vmatpush.bf16.msrb.mxu3 %v1803_v48 }
 0x25a   : > { %1355 = vmatpush.bf16.msra.mxu1 %v1822_v8 }
 0x25e   : > { %1356 = vmatpush.bf16.msra.mxu1 %v1821_v35 }
 0x262   : > { %1357 = vmatpush.bf16.msra.mxu1 %v1820_v39 }
 0x266   : > { %1358 = vmatpush.bf16.msra.mxu1 %v1819_v0 }
 0x29e   : > { %v740_v50 = vpop.xlane.xlu1 %739 }
 0x29f   : > { %v741_v51 = vmul.f32 %v740_v50, %v2235_v11  ;;  %v1831_v50 = vld [vmem:[#allocation5 + $0xe0] sm:$0xff] }
 0x2a0   : > { %v744_v52 = vpop.xlane.xlu2 %743 }
 0x2a1   : > { %v746_v53 = vmul.f32 %v741_v51, %v741_v51  ;;  %v745_v54 = vmul.f32 %v744_v52, %v2235_v11  ;;  %v1522_v11 = vor.u32 %v1772_v12, %v1519_v13  ;;  %v749_v7 = vsub.f32 %v2335_v32, %v741_v51  ;;  %v1828_v12 = vld [vmem:[#allocation5 + $0xc8] sm:$0xff] }
 0x2a3   : > { %v747_v59 = vsub.f32 %v745_v54, %v746_v53  ;;  %1019 = vmatpush.bf16.msrb.mxu2 %v1522_v11  ;;  %v1830_v53 = vld [vmem:[#allocation5 + $0xd8] sm:$0xff]  ;;  %v805_v54 = vperm.slane %v803_v46, 0 }
 0x2a5   : > { %v748_v2 = vmax.f32 %v747_v59, 0.0  ;;  %v1829_v59 = vld [vmem:[#allocation5 + $0xd0] sm:$0xff] }
 0x2a7   : > { %v750_v9 = vadd.f32 1e-06, %v748_v2 }
 0x2a9   : > { %1929 = vrsqrt.f32 %v750_v9  ;;  %vm757_vm8 = vweird.f32 %v750_v9 }
 0x2af   : > { %v1930_v14 = vpop.eup %1929 }
 0x2b0   : > { %v752_v15 = vmul.f32 %v1930_v14, %v750_v9  ;;  %vm758_vm7 = vweird.f32 %v1930_v14 }
 0x2b1   : > { %vm759_vm9 = vmor %vm757_vm8, %vm758_vm7 }
 0x2b2   : > { %v753_v16 = vmul.f32 %v1930_v14, %v752_v15 }
 0x2b4   : > { %v754_v19 = vmul.f32 0.5, %v753_v16 }
 0x2b6   : > { %v755_v21 = vsub.f32 1.5, %v754_v19 }
 0x2b8   : > { %v756_v22 = vmul.f32 %v1930_v14, %v755_v21 }
 0x2ba   : > { %v760_v24 = vsel %vm759_vm9, %v1930_v14, %v756_v22 }
 0x2bb   : > { %v761_v25 = vmul.f32 %v760_v24, %v749_v7  ;;  %v808_v24 = vperm.slane %v803_v46, 3 }
 0x2bd   : > { %v765_v26 = vmul.f32 %v1906_v23, %v761_v25 }
 0x2bf   : > { %v769_v58 = vadd.f32 %v1907_v57, %v765_v26 }
 0x2c1   : > { %v770_v60 = vpack.c.bf16 %v769_v58, %v769_v58 }
 0x2c3   : > { %981 = vmatmul.bf16.vlgmr.msra.gmra.mxu2 %v770_v60  ;;  %994 = vmatmul.bf16.vlgmr.msra.gmra.mxu3 %v770_v60 }
 0x2c4   : > { %1007 = vmatmul.bf16.vlgmr.msrb.gmra.mxu1 %v770_v60  ;;  %1364 = vmatpush.bf16.msra.mxu2 %v1834_v38 }
 0x2c8   : > { %1365 = vmatpush.bf16.msra.mxu2 %v1833_v42 }
 0x2cc   : > { %1366 = vmatpush.bf16.msra.mxu2 %v1832_v45 }
 0x2d0   : > { %1367 = vmatpush.bf16.msra.mxu2 %v1831_v50 }
 0x2d3   : > { %1020 = vmatmul.bf16.vlgmr.msrb.gmra.mxu2 %v770_v60 }
 0x2d4   : > { %1368 = vmatpush.bf16.msra.mxu2 %v1830_v53 }
 0x2d8   : > { %1369 = vmatpush.bf16.msra.mxu2 %v1829_v59 }
 0x2dc   : > { %1370 = vmatpush.bf16.msra.mxu2 %v1828_v12 }
 0x2e0   : > { %1371 = vmatpush.bf16.msra.mxu2 %v1827_v18 }
 0x341   : > { %v1008_v51 = vpop.f32.mrf.mxu1 }
 0x342   : > { %v1009_v52 = vadd.f32 %v1008_v51, %v807_v47  ;;  %v1908_v51 = vld [vmem:[%s2400_s12] ss:$0 sm:$0xff] }
 0x344   : > { %v1027_v56 = vmul.f32 %v1009_v52, %v1009_v52 }
 0x346   : > { %v1031_v61 = vmul.f32 %v1027_v56, %v1009_v52  ;;  %v982_v62 = vpop.f32.mrf.mxu2  ;;  %v995_v63 = vpop.f32.mrf.mxu3 }
 0x347   : > { %v983_v2 = vadd.f32 %v982_v62, %v805_v54  ;;  %v996_v3 = vadd.f32 %v995_v63, %v806_v55 }
 0x348   : > { %v1035_v4 = vmul.f32 0.044715, %v1031_v61 }
 0x349   : > { %v1025_v6 = vmul.f32 %v983_v2, %v983_v2  ;;  %v1026_v9 = vmul.f32 %v996_v3, %v996_v3  ;;  %v1010_v10 = vpop.f32.mrf.mxu1 }
 0x34a   : > { %v1039_v13 = vadd.f32 %v1035_v4, %v1009_v52 }
 0x34b   : > { %v1029_v11 = vmul.f32 %v1025_v6, %v983_v2  ;;  %v1030_v14 = vmul.f32 %v1026_v9, %v996_v3 }
 0x34c   : > { %v1043_v15 = vmul.f32 0.7978846, %v1039_v13 }
 0x34d   : > { %v1033_v16 = vmul.f32 0.044715, %v1029_v11  ;;  %v1034_v17 = vmul.f32 0.044715, %v1030_v14 }
 0x34e   : > { %1931 = vtanh.f32 %v1043_v15  ;;  %v984_v19 = vpop.f32.mrf.mxu2  ;;  %v997_v20 = vpop.f32.mrf.mxu3 }
 0x34f   : > { %v1037_v21 = vadd.f32 %v1033_v16, %v983_v2  ;;  %v1038_v22 = vadd.f32 %v1034_v17, %v996_v3 }
 0x351   : > { %v1041_v7 = vmul.f32 0.7978846, %v1037_v21  ;;  %v1042_v23 = vmul.f32 0.7978846, %v1038_v22 }
 0x353   : > { %1933 = vtanh.f32 %v1041_v7 }
 0x354   : > { %v1932_v25 = vpop.eup %1931  ;;  %1935 = vtanh.f32 %v1042_v23 }
 0x355   : > { %v1051_v57 = vadd.f32 1.0, %v1932_v25 }
 0x356   : > { %v1021_v26 = vpop.f32.mrf.mxu2 }
 0x357   : > { %v1022_v58 = vadd.f32 %v1021_v26, %v808_v24  ;;  %v1055_v60 = vmul.f32 0.5, %v1051_v57 }
 0x359   : > { %v1934_v27 = vpop.eup %1933  ;;  %v1028_v28 = vmul.f32 %v1022_v58, %v1022_v58  ;;  %v1059_v29 = vmul.f32 %v1055_v60, %v1009_v52 }
 0x35a   : > { %v1936_v1 = vpop.eup %1935  ;;  %v1049_v30 = vadd.f32 1.0, %v1934_v27 }
 0x35b   : > { %v1032_v5 = vmul.f32 %v1028_v28, %v1022_v58  ;;  %v1063_v31 = vpack.c.bf16 %v1059_v29, %v1059_v29  ;;  %v1050_v8 = vadd.f32 1.0, %v1936_v1 }
 0x35c   : > { %v1053_v33 = vmul.f32 0.5, %v1049_v30 }
 0x35d   : > { %v1036_v34 = vmul.f32 0.044715, %v1032_v5  ;;  %1359 = vmatmul.bf16.vlgmr.msra.gmra.mxu1 %v1063_v31  ;;  %v1054_v35 = vmul.f32 0.5, %v1050_v8 }
 0x35e   : > { %v1023_v36 = vpop.f32.mrf.mxu2  ;;  %v1057_v37 = vmul.f32 %v1053_v33, %v983_v2 }
 0x35f   : > { %v1040_v38 = vadd.f32 %v1036_v34, %v1022_v58  ;;  %v1058_v39 = vmul.f32 %v1054_v35, %v996_v3 }
 0x360   : > { %v1061_v40 = vpack.c.bf16 %v1057_v37, %v1057_v37 }
 0x361   : > { %v1044_v41 = vmul.f32 0.7978846, %v1040_v38  ;;  %v1062_v42 = vpack.c.bf16 %v1058_v39, %v1058_v39 }
 0x362   : > { %1333 = vmatmul.bf16.vlgmr.msrb.gmra.mxu3 %v1061_v40 }
 0x363   : > { %1937 = vtanh.f32 %v1044_v41  ;;  %1346 = vmatmul.bf16.vlgmr.msrb.gmra.mxu0 %v1062_v42 }
 0x369   : > { %v1938_v0 = vpop.eup %1937 }
 0x36a   : > { %v1052_v43 = vadd.f32 1.0, %v1938_v0 }
 0x36c   : > { %v1056_v44 = vmul.f32 0.5, %v1052_v43 }
 0x36e   : > { %v1060_v45 = vmul.f32 %v1056_v44, %v1022_v58 }
 0x370   : > { %v1064_v46 = vpack.c.bf16 %v1060_v45, %v1060_v45 }
 0x372   : > { %1372 = vmatmul.bf16.vlgmr.msra.gmra.mxu2 %v1064_v46 }
 0x3da   : > { %v1360_v47 = vpop.f32.mrf.mxu1 }
 0x3e0   : > { %v1347_v48 = vpop.f32.mrf.mxu0 }
 0x3e2   : > { %v1362_v49 = vpop.f32.mrf.mxu1 }
 0x3e5   : > { %v1334_v50 = vpop.f32.mrf.mxu3 }
 0x3e6   : > { %v1335_v53 = vadd.f32 %v1908_v51, %v1334_v50 }
 0x3e8   : > { %v1349_v52 = vpop.f32.mrf.mxu0  ;;  %v1348_v55 = vadd.f32 %v1347_v48, %v1335_v53 }
 0x3ea   : > { %v1361_v56 = vadd.f32 %v1360_v47, %v1348_v55 }
 0x3ed   : > { %v1336_v54 = vpop.f32.mrf.mxu3 }
 0x3f5   : > { %v1373_v59 = vpop.f32.mrf.mxu2 }
 0x3f6   : > { %v1374_v61 = vadd.f32 %v1373_v59, %v1361_v56 }
 0x3f8   : > { %v1377_v62 = vadd.f32 %v1374_v61, %v2335_v32 }
 0x3fa   : > { %1378 = vst [vmem:[%s465_s22] sm:$0xff] %v1377_v62 }
 0x3fb   : > { %2026 = shalt.err (!%p2023_p8)
}
 0x3fc   : > { %1843 = dma.vmem_to_hbm [thread:$0]  (%p2187_p5), %s1393_s27, 128, %s1395_s9, %s1380_s14  }
 0x3fd   : > { %v1375_v32 = vpop.f32.mrf.mxu2 }
 0x3fe PF: > { %p1860_p9 = scmp.ge.s32.totalorder %s2069_s28, 2  ;;  %s1406_s16 = sand.u32 1, %s2057_s25  }
 0x3ff   : > { %s1407_s21 = scalar_lea.sflag [#allocation4], %s1406_s16 }
 0x400   : > { %p1853_p10 = pnand %p1860_p9, %p2191_p6 }
 0x402   : > { %p1854_p11 = pneg %p1853_p10 }
 0x404   : > { %2052 = dma.done.wait (%p1854_p11), %s1407_s21, 128  }
 0x405   : > { %2054 = vsyncadd (%p1854_p11), %s1407_s21, 4294967168  ;;  %s2416_s28 = sld [smem:[#allocation12_spill]]  ;;  %s2419_s25 = smov %s2061_s26 }
 0x406   : > { %s2417_s22 = sld [smem:[#allocation11_spill]] }
 0x407   : > { %s2418_s27 = sld [smem:[#allocation13_spill]] }
 0x40b   : > { %p25_p12 = scmp.ge.s32.totalorder %s2416_s28, 4  }
 0x40c   : > { %s2420_s26 = smov %s2417_s22 }
 0x40d   :  { %27 = sbr.rel (!%p25_p12) target bundleno = 7 (0x7), region = 116 }
 0x412   :  { %1413 = vsyncpa [#allocation3], 1 }
 0x413   :  { %1415 = vsyncpa [#allocation3 + $0x1], 1 }
 0x414   :  { %1416 = vsyncpa [#allocation6], 1 }
 0x415   :  { %1417 = vsyncpa [#allocation4], 1 }
 0x416   :  { %1419 = vsyncpa [#allocation4 + $0x1], 1 }

</bundles_post_ra>
